<compile_context>
chip_gen: v5e
topology: v5e:2x2
jax: 0.10.0
libtpu: 0.0.40
codegen_flags: <defaults>
</compile_context>

<pallas_src>
import math
import numpy as np
import jax
import jax.numpy as jnp
from jax.experimental import pallas as pl
from jax.experimental.pallas import tpu as pltpu

_F32_MIN = float(np.finfo(np.float32).min)
_N_PER_LAYER = 21   # 4 packed small-vector arrays + 17 weight matrices per layer


# ---------------------------------------------------------------------------
# Math helpers shared by the Pallas kernel and the pure-JAX reference (all
# arguments are plain arrays).  Only Mosaic-friendly ops are used.
# ---------------------------------------------------------------------------

def _ln(x, g, b, eps=1e-5):
    m = jnp.mean(x, axis=-1, keepdims=True)
    v = jnp.mean(jnp.square(x - m), axis=-1, keepdims=True)
    return (x - m) * jax.lax.rsqrt(v + eps) * g + b


def _linear(x, w, b):
    # bf16 x bf16 -> f32 accumulation on the MXU (projection weights are stored bf16)
    B, T, Din = x.shape
    y = jnp.dot(x.reshape(B * T, Din).astype(w.dtype), w,
                preferred_element_type=jnp.float32) + b
    return y.reshape(B, T, w.shape[-1])


def _swish(x):
    return x * jax.nn.sigmoid(x)


def _gelu(x):
    # TODO(synk): torch.nn.GELU defaults to the exact erf form; the tanh approximation
    # is used because erf is not guaranteed to lower in Mosaic.
    return jax.nn.gelu(x, approximate=True)


def _ffn(x, w1, b1, w2, b2):
    # PositionwiseFeedForward with Swish activation (dropout = identity at eval).
    return _linear(_swish(_linear(x, w1, b1)), w2, b2)


def _softmax_time(s, approx_recip=False):
    # softmax over the time axis (axis=1) of a (B, T, H) tensor
    m = jnp.max(s, axis=1, keepdims=True)
    e = jnp.exp(s - m)
    d = jnp.sum(e, axis=1, keepdims=True)
    if approx_recip:
        return e * pl.reciprocal(d, approx=True)     # EUP slot inside the kernel
    return e / d


def _time_pool(w_t, x_t, E):
    """pooled[b, 1, j] = sum_t w_t[b, t, j // hd] * x_t[b, t, j].

    Time reduction runs on the MXU as an (H,T)x(T,D) contraction (bf16 in, f32
    accumulate); head->channel expansion is a VPU mask-multiply with
    E[h, j] = (j // hd == h) plus a tiny sublane reduction over H.  No
    K=num_heads matmul and no expanded (B,T,D) tensor is materialized.
    """
    B = w_t.shape[0]
    outs = []
    for b in range(B):                                    # static (B == 1 inside kernel)
        m = jax.lax.dot_general(
            w_t[b].astype(jnp.bfloat16), x_t[b].astype(jnp.bfloat16),
            dimension_numbers=(((0,), (0,)), ((), ())),
            preferred_element_type=jnp.float32)           # (H, D)
        outs.append(jnp.sum(m * E, axis=0, keepdims=True))    # (1, D)
    return jnp.stack(outs, axis=0)                         # (B, 1, D)


def _dwconv_time(x, w, b):
    # Depthwise Conv1d over time, 'same' zero padding; w: (K, C), b: (1, C).
    # Accumulation starts from the centre tap and shifted taps are built with small
    # boundary zero blocks: no zero-init store and no full (B, T+K-1, C) padded copy.
    B, T, C = x.shape
    K = w.shape[0]
    pad = (K - 1) // 2
    out = x * w[pad][None, None, :]
    for s in range(1, pad + 1):                            # static, small kernel size
        zs = jnp.zeros((B, s, C), dtype=x.dtype)
        # tap k = pad + s reads x[t + s]
        out = out + jnp.concatenate([x[:, s:, :], zs], axis=1) * w[pad + s][None, None, :]
        # tap k = pad - s reads x[t - s]
        out = out + jnp.concatenate([zs, x[:, :T - s, :]], axis=1) * w[pad - s][None, None, :]
    return out + b


def _fast_self_attention(x, pad, E, wq, bq, wqa, bqa, wk, bk, wka, bka, wt, bt,
                         approx_recip=False):
    """Fastformer additive attention.  x: (B,T,D); pad: (B,T,1) True on padding."""
    B, T, D = x.shape
    H = wqa.shape[-1]
    hd = D // H
    scale = 1.0 / float(np.sqrt(hd))

    mq = _linear(x, wq, bq)                    # mixed_query_layer (B,T,D)
    mk = _linear(x, wk, bk)                    # mixed_key_layer   (B,T,D)

    qs = _linear(mq, wqa, bqa) * scale         # query_for_score   (B,T,H)
    qs = jnp.where(pad, _F32_MIN, qs)
    qw = _softmax_time(qs, approx_recip)       # (B,T,H)
    pooled_q = _time_pool(qw, mq, E)           # (B,1,D)

    mixed_qk = mk * pooled_q                   # (B,T,D)
    ks = _linear(mixed_qk, wka, bka) * scale   # (B,T,H)
    ks = jnp.where(pad, _F32_MIN, ks)
    kw = _softmax_time(ks, approx_recip)
    pooled_k = _time_pool(kw, mixed_qk, E)     # (B,1,D)

    wv = pooled_k * mq                         # value == query (shared weights)
    return _linear(wv, wt, bt) + mq


# row indices inside the packed (19, D) per-layer vector block
(_G_FFM, _B_FFM, _B2M, _G_MHA, _B_MHA, _BQ, _BK, _BT, _G_MLP, _B_MLP, _BC2,
 _BFU1, _BFU2, _BMG, _G_FF, _B_FF, _B2, _G_FIN, _B_FIN) = range(19)


def _layer_forward(x, pad, E, p, approx_recip=False):
    """One EBranchformerEncoderLayer (eval mode, pos_emb path, FastSelfAttention)."""
    vecD, vecU, vecH, vecC = p[0], p[1], p[2], p[3]
    (w1m, w2m, wq, wqa, wk, wka, wt, wc1r, wc1g, wconv, wc2,
     wfu1, wfu2, wmg1, wmg2, w1, w2) = p[4:]

    d = lambda i: vecD[i:i + 1]                # (1, D) row of the packed vector block
    B, T, D = x.shape

    # macaron feed-forward (ff_scale = 0.5)
    x = x + 0.5 * _ffn(_ln(x, d(_G_FFM), d(_B_FFM)), w1m, vecU[0:1], w2m, d(_B2M))

    # branch 1: FastSelfAttention
    x1 = _fast_self_attention(_ln(x, d(_G_MHA), d(_B_MHA)), pad, E,
                              wq, d(_BQ), wqa, vecH[0:1], wk, d(_BK),
                              wka, vecH[1:2], wt, d(_BT), approx_recip)

    # branch 2: ConvolutionalGatingMLP (channel_proj1 split into x_r / x_g halves)
    x2 = _ln(x, d(_G_MLP), d(_B_MLP))
    xr = _gelu(_linear(x2, wc1r, vecC[0:1]))
    xg = _gelu(_linear(x2, wc1g, vecC[1:2]))
    xg = _ln(xg, vecC[2:3], vecC[3:4])
    xg = _dwconv_time(xg, wconv, vecC[4:5])
    # TODO(synk): gate_activation='Swich' (typo in the module defaults) treated as Swish.
    xg = _swish(xg)
    x2 = _linear(xr * xg, wc2, d(_BC2))

    # merge: concat([x1,x2]) + depthwise conv fusion + merge_proj, decomposed per half
    # so no lane-dim concatenation is needed inside the kernel.
    m1 = x1 + _dwconv_time(x1, wfu1, d(_BFU1))
    m2 = x2 + _dwconv_time(x2, wfu2, d(_BFU2))
    merged = (jnp.dot(m1.reshape(B * T, D).astype(wmg1.dtype), wmg1,
                      preferred_element_type=jnp.float32)
              + jnp.dot(m2.reshape(B * T, D).astype(wmg2.dtype), wmg2,
                        preferred_element_type=jnp.float32)
              + d(_BMG)).reshape(B, T, D)
    x = x + merged

    # feed-forward (ff_scale = 0.5)
    x = x + 0.5 * _ffn(_ln(x, d(_G_FF), d(_B_FF)), w1, vecU[1:2], w2, d(_B2))

    # per-layer final LayerNorm
    return _ln(x, d(_G_FIN), d(_B_FIN))


# ---------------------------------------------------------------------------
# Pallas kernel: grid=(batch, num_layers); the output block is the resident state.
# ---------------------------------------------------------------------------

def _encoder_kernel(*refs):
    x_ref, mask_ref, e_ref = refs[0], refs[1], refs[2]
    p_refs = refs[3:3 + _N_PER_LAYER]
    ag_ref = refs[3 + _N_PER_LAYER]
    ab_ref = refs[4 + _N_PER_LAYER]
    o_ref = refs[5 + _N_PER_LAYER]

    D = x_ref.shape[-1]
    layer = pl.program_id(1)

    @pl.when(layer == 0)
    def _init():
        # RelPositionalEncoding scales x by sqrt(d_model); the pos_emb tensor itself is
        # never consumed (FastSelfAttention ignores it; cgMLP passes it through).
        # The output block doubles as the VMEM-resident running hidden state.
        o_ref[...] = x_ref[...] * math.sqrt(D)

    x = o_ref[...]
    mask = mask_ref[...]                      # (1, T, 1), 1.0 on valid frames
    pad = mask == 0.0
    params = tuple(r[...] for r in p_refs)
    x = _layer_forward(x, pad, e_ref[...], params, approx_recip=True)
    o_ref[...] = x

    @pl.when(layer == pl.num_programs(1) - 1)
    def _finalize():
        o_ref[...] = _ln(x, ag_ref[...], ab_ref[...]) * mask   # after_norm + zero padding


def ebranchformer_forward(x, mask3, E, stacked_params, after_g, after_b):
    B, T, D = x.shape
    L = stacked_params[0].shape[0]

    in_specs = [
        pl.BlockSpec((1, T, D), lambda b, l: (b, 0, 0)),     # x, per batch tile
        pl.BlockSpec((1, T, 1), lambda b, l: (b, 0, 0)),     # nonpadding mask (B,T,1)
        pl.BlockSpec(E.shape, lambda b, l: (0, 0)),          # head->channel mask, resident
    ]
    inputs = [x, mask3, E]
    for arr in stacked_params:                               # per-layer weights, layer axis squeezed
        tail = arr.shape[1:]
        zeros = (0,) * len(tail)
        in_specs.append(pl.BlockSpec((None,) + tail, lambda b, l, _z=zeros: (l,) + _z))
        inputs.append(arr)
    in_specs.append(pl.BlockSpec((1, D), lambda b, l: (0, 0)))   # after_norm gamma
    in_specs.append(pl.BlockSpec((1, D), lambda b, l: (0, 0)))   # after_norm beta
    inputs.extend([after_g, after_b])

    # Explicit scoped-VMEM budget: resident state + double-buffered per-layer weight
    # blocks + activation intermediates, clamped under v7x's 64 MiB physical VMEM.
    per_layer_bytes = sum(int(np.prod(a.shape[1:])) * a.dtype.itemsize
                          for a in stacked_params)
    max_width = max(int(a.shape[-1]) for a in stacked_params)
    est = (2 * T * D + T) * 4 + 2 * per_layer_bytes + 12 * T * max_width * 4
    vmem_limit = int(min(max(4 * est, 32 * 2 ** 20), 56 * 2 ** 20))

    return pl.pallas_call(
        _encoder_kernel,
        out_shape=jax.ShapeDtypeStruct((B, T, D), jnp.float32),
        grid_spec=pltpu.PrefetchScalarGridSpec(
            num_scalar_prefetch=0,
            grid=(B, L),                                     # layer axis innermost
            in_specs=in_specs,
            out_specs=pl.BlockSpec((1, T, D), lambda b, l: (b, 0, 0)),
        ),
        compiler_params=pltpu.CompilerParams(
            dimension_semantics=("parallel", "arbitrary"),   # batch across cores (v7x)
            vmem_limit_bytes=vmem_limit),
    )(*inputs)


# ---------------------------------------------------------------------------
# Deterministic parameter construction + pure-JAX reference (same math helpers).
# ---------------------------------------------------------------------------

def make_head_expand_mask(H, D):
    hd = D // H
    hid = np.arange(H)[:, None]
    cid = np.arange(D)[None, :]
    return jnp.asarray((cid // hd == hid).astype(np.float32))   # (H, D)


def make_layer_params(key, D, H, U, Ucg, Kc, Km):
    """Packed per-layer params: [vecD(19,D), vecU(2,U), vecH(2,H), vecC(5,Ch)] + 17 mats.

    Large projection matrices are stored in bf16 (MXU-native); depthwise-conv weights
    and all packed vectors stay f32.
    """
    Ch = Ucg // 2
    ks = iter(jax.random.split(key, 40))

    def w(shape, scale):
        return jax.random.normal(next(ks), shape, dtype=jnp.float32) * scale

    s = lambda fan_in: 1.0 / float(np.sqrt(fan_in))
    bf = lambda a: a.astype(jnp.bfloat16)
    ones = lambda n: jnp.ones((n,), jnp.float32)
    zeros = lambda n: jnp.zeros((n,), jnp.float32)
    bias = lambda n: w((n,), 0.01)

    # --- big matrices (torch Linear weights stored transposed as (in, out)) ---
    w1m, w2m = w((D, U), s(D)), w((U, D), s(U))                     # ff_macaron
    wq, wk, wt = w((D, D), s(D)), w((D, D), s(D)), w((D, D), s(D))  # attn q / k / transform
    wqa, wka = w((D, H), s(D)), w((D, H), s(D))                     # attn query_att / key_att
    wc1 = w((D, Ucg), s(D))                                         # cgmlp channel_proj1
    wconv = w((Kc, Ch), s(Kc))                                      # csgu depthwise conv
    wc2 = w((Ch, D), s(Ch))                                         # cgmlp channel_proj2
    wfuse = w((Km, 2 * D), s(Km))                                   # depthwise_conv_fusion
    wmerge = w((2 * D, D), s(2 * D))                                # merge_proj
    w1, w2 = w((D, U), s(D)), w((U, D), s(U))                       # ff

    # --- packed small vectors (row order given by the _* index constants) ---
    vecD = jnp.stack([
        ones(D), zeros(D),            # norm_ff_macaron gamma/beta
        bias(D),                      # ff_macaron output bias
        ones(D), zeros(D),            # norm_mha gamma/beta
        bias(D), bias(D), bias(D),    # attn query / key / transform biases
        ones(D), zeros(D),            # norm_mlp gamma/beta
        bias(D),                      # channel_proj2 bias
        bias(D), bias(D),             # fusion conv biases (chans 0:D, D:2D)
        bias(D),                      # merge_proj bias
        ones(D), zeros(D),            # norm_ff gamma/beta
        bias(D),                      # ff output bias
        ones(D), zeros(D),            # norm_final gamma/beta
    ], axis=0)                                                       # (19, D)
    vecU = jnp.stack([bias(U), bias(U)], axis=0)                     # ff_macaron / ff first biases
    vecH = jnp.stack([bias(H), bias(H)], axis=0)                     # query_att / key_att biases
    bc1 = w((Ucg,), 0.01)
    vecC = jnp.stack([bc1[:Ch], bc1[Ch:], ones(Ch), zeros(Ch), bias(Ch)], axis=0)

    mats = [bf(w1m), bf(w2m), bf(wq), bf(wqa), bf(wk), bf(wka), bf(wt),
            bf(wc1[:, :Ch]), bf(wc1[:, Ch:]), wconv, bf(wc2),
            wfuse[:, :D], wfuse[:, D:], bf(wmerge[:D]), bf(wmerge[D:]),
            bf(w1), bf(w2)]
    return [vecD, vecU, vecH, vecC] + mats


def reference_forward(x, mask3, E, per_layer_params, after_g, after_b):
    D = x.shape[-1]
    pad = mask3 == 0.0
    h = x * math.sqrt(D)
    for p in per_layer_params:
        h = _layer_forward(h, pad, E, tuple(p))
    return _ln(h, after_g, after_b) * mask3


if __name__ == "__main__":
    B, T = 2, 8          # batch, time
    D, L, H = 32, 2, 4   # hidden_size, num_layers, num_heads
    U = 64               # linear_units (FFN)
    Ucg = 64             # cgmlp_linear_units
    Kc = 7               # cgmlp_conv_kernel
    Km = 3               # merge_conv_kernel

    key = jax.random.PRNGKey(0)
    key, kx = jax.random.split(key)
    x = jax.random.normal(kx, (B, T, D), dtype=jnp.float32)
    x = x.at[1, 6:, :].set(0.0)   # trailing padding on batch item 1

    # nonpadding_mask = xs_pad.abs().sum(-1) > 0
    nonpadding = (jnp.sum(jnp.abs(x), axis=-1) > 0).astype(jnp.float32)
    mask3 = nonpadding[:, :, None]                     # (B, T, 1)

    E = make_head_expand_mask(H, D)                    # (H, D) head->channel mask

    per_layer = []
    for _ in range(L):
        key, kl = jax.random.split(key)
        per_layer.append(make_layer_params(kl, D, H, U, Ucg, Kc, Km))
    stacked = [jnp.stack([per_layer[l][i] for l in range(L)], axis=0)
               for i in range(_N_PER_LAYER)]
    after_g = jnp.ones((1, D), jnp.float32)
    after_b = jnp.zeros((1, D), jnp.float32)

    out = ebranchformer_forward(x, mask3, E, stacked, after_g, after_b)
    out = jax.block_until_ready(out)

    ref = jax.block_until_ready(
        reference_forward(x, mask3, E, per_layer, after_g, after_b))

    assert out.shape == (B, T, D)
    assert bool(jnp.isfinite(out).all())
    np.testing.assert_allclose(np.asarray(out), np.asarray(ref), rtol=2e-2, atol=2e-2)
    print("KERNEL_OK")
</pallas_src>

<mosaic_0001>
module attributes {stable_mosaic.version = 11 : i64} {
  func.func @_encoder_kernel(%arg0: i32, %arg1: i32, %arg2: memref<1x8x32xf32, #tpu.memory_space<vmem>>, %arg3: memref<1x8x1xf32, #tpu.memory_space<vmem>>, %arg4: memref<4x32xf32, #tpu.memory_space<vmem>>, %arg5: memref<1x19x32xf32, #tpu.memory_space<vmem>>, %arg6: memref<1x2x64xf32, #tpu.memory_space<vmem>>, %arg7: memref<1x2x4xf32, #tpu.memory_space<vmem>>, %arg8: memref<1x5x32xf32, #tpu.memory_space<vmem>>, %arg9: memref<1x32x64xbf16, #tpu.memory_space<vmem>>, %arg10: memref<1x64x32xbf16, #tpu.memory_space<vmem>>, %arg11: memref<1x32x32xbf16, #tpu.memory_space<vmem>>, %arg12: memref<1x32x4xbf16, #tpu.memory_space<vmem>>, %arg13: memref<1x32x32xbf16, #tpu.memory_space<vmem>>, %arg14: memref<1x32x4xbf16, #tpu.memory_space<vmem>>, %arg15: memref<1x32x32xbf16, #tpu.memory_space<vmem>>, %arg16: memref<1x32x32xbf16, #tpu.memory_space<vmem>>, %arg17: memref<1x32x32xbf16, #tpu.memory_space<vmem>>, %arg18: memref<1x7x32xf32, #tpu.memory_space<vmem>>, %arg19: memref<1x32x32xbf16, #tpu.memory_space<vmem>>, %arg20: memref<1x3x32xf32, #tpu.memory_space<vmem>>, %arg21: memref<1x3x32xf32, #tpu.memory_space<vmem>>, %arg22: memref<1x32x32xbf16, #tpu.memory_space<vmem>>, %arg23: memref<1x32x32xbf16, #tpu.memory_space<vmem>>, %arg24: memref<1x32x64xbf16, #tpu.memory_space<vmem>>, %arg25: memref<1x64x32xbf16, #tpu.memory_space<vmem>>, %arg26: memref<1x32xf32, #tpu.memory_space<vmem>>, %arg27: memref<1x32xf32, #tpu.memory_space<vmem>>, %arg28: memref<1x8x32xf32, #tpu.memory_space<vmem>>) attributes {dimension_semantics = [#tpu.dimension_semantics<parallel>, #tpu.dimension_semantics<arbitrary>], iteration_bounds = array<i64: 2, 2>, scalar_prefetch = 0 : i64, scratch_operands = 0 : i64, tpu.core_type = #tpu.core_type<tc>, window_params = [{transform_indices = @transform_0, window_bounds = array<i64: 1, 8, 32>}, {transform_indices = @transform_1, window_bounds = array<i64: 1, 8, 1>}, {pipeline_mode = #tpu.pipeline_mode<synchronous>, transform_indices = @transform_2, window_bounds = array<i64: 4, 32>}, {transform_indices = @transform_3, window_bounds = array<i64: 1, 19, 32>}, {transform_indices = @transform_4, window_bounds = array<i64: 1, 2, 64>}, {transform_indices = @transform_5, window_bounds = array<i64: 1, 2, 4>}, {transform_indices = @transform_6, window_bounds = array<i64: 1, 5, 32>}, {transform_indices = @transform_7, window_bounds = array<i64: 1, 32, 64>}, {transform_indices = @transform_8, window_bounds = array<i64: 1, 64, 32>}, {transform_indices = @transform_9, window_bounds = array<i64: 1, 32, 32>}, {transform_indices = @transform_10, window_bounds = array<i64: 1, 32, 4>}, {transform_indices = @transform_11, window_bounds = array<i64: 1, 32, 32>}, {transform_indices = @transform_12, window_bounds = array<i64: 1, 32, 4>}, {transform_indices = @transform_13, window_bounds = array<i64: 1, 32, 32>}, {transform_indices = @transform_14, window_bounds = array<i64: 1, 32, 32>}, {transform_indices = @transform_15, window_bounds = array<i64: 1, 32, 32>}, {transform_indices = @transform_16, window_bounds = array<i64: 1, 7, 32>}, {transform_indices = @transform_17, window_bounds = array<i64: 1, 32, 32>}, {transform_indices = @transform_18, window_bounds = array<i64: 1, 3, 32>}, {transform_indices = @transform_19, window_bounds = array<i64: 1, 3, 32>}, {transform_indices = @transform_20, window_bounds = array<i64: 1, 32, 32>}, {transform_indices = @transform_21, window_bounds = array<i64: 1, 32, 32>}, {transform_indices = @transform_22, window_bounds = array<i64: 1, 32, 64>}, {transform_indices = @transform_23, window_bounds = array<i64: 1, 64, 32>}, {pipeline_mode = #tpu.pipeline_mode<synchronous>, transform_indices = @transform_24, window_bounds = array<i64: 1, 32>}, {pipeline_mode = #tpu.pipeline_mode<synchronous>, transform_indices = @transform_25, window_bounds = array<i64: 1, 32>}, {transform_indices = @transform_26, window_bounds = array<i64: 1, 8, 32>}]} {
    %c0_i32 = arith.constant 0 : i32
    %0 = arith.cmpi eq, %arg1, %c0_i32 : i32
    %1 = arith.extui %0 : i1 to i32
    %c0_i32_0 = arith.constant 0 : i32
    %2 = arith.cmpi ne, %1, %c0_i32_0 : i32
    scf.if %2 {
      %c0_149 = arith.constant 0 : index
      %c0_150 = arith.constant 0 : index
      %c0_151 = arith.constant 0 : index
      %526 = vector.load %arg2[%c0_149, %c0_150, %c0_151] : memref<1x8x32xf32, #tpu.memory_space<vmem>>, vector<1x8x32xf32>
      %cst_152 = arith.constant 5.65685415 : f32
      %527 = vector.broadcast %cst_152 : f32 to vector<1x8x32xf32>
      %528 = arith.mulf %526, %527 : vector<1x8x32xf32>
      %c0_153 = arith.constant 0 : index
      %c0_154 = arith.constant 0 : index
      %c0_155 = arith.constant 0 : index
      %529 = vector.load %arg28[%c0_153, %c0_154, %c0_155] : memref<1x8x32xf32, #tpu.memory_space<vmem>>, vector<1x8x32xf32>
      tpu.vector_store %arg28[%c0_153, %c0_154, %c0_155], %528 {strides = array<i32>} : memref<1x8x32xf32, #tpu.memory_space<vmem>>, vector<1x8x32xf32>,
    } else {
    }
    %c0 = arith.constant 0 : index
    %c0_1 = arith.constant 0 : index
    %c0_2 = arith.constant 0 : index
    %3 = vector.load %arg28[%c0, %c0_1, %c0_2] : memref<1x8x32xf32, #tpu.memory_space<vmem>>, vector<1x8x32xf32>
    %c0_3 = arith.constant 0 : index
    %c0_4 = arith.constant 0 : index
    %c0_5 = arith.constant 0 : index
    %4 = vector.load %arg3[%c0_3, %c0_4, %c0_5] : memref<1x8x1xf32, #tpu.memory_space<vmem>>, vector<1x8x1xf32>
    %cst = arith.constant 0.000000e+00 : f32
    %5 = vector.broadcast %cst : f32 to vector<1x8x1xf32>
    %6 = arith.cmpf oeq, %4, %5 : vector<1x8x1xf32>
    %c0_6 = arith.constant 0 : index
    %c0_7 = arith.constant 0 : index
    %c0_8 = arith.constant 0 : index
    %7 = vector.load %arg5[%c0_6, %c0_7, %c0_8] : memref<1x19x32xf32, #tpu.memory_space<vmem>>, vector<1x19x32xf32>
    %8 = vector.shape_cast %7 : vector<1x19x32xf32> to vector<19x32xf32>
    %c0_9 = arith.constant 0 : index
    %c0_10 = arith.constant 0 : index
    %c0_11 = arith.constant 0 : index
    %9 = vector.load %arg6[%c0_9, %c0_10, %c0_11] : memref<1x2x64xf32, #tpu.memory_space<vmem>>, vector<1x2x64xf32>
    %10 = vector.shape_cast %9 : vector<1x2x64xf32> to vector<2x64xf32>
    %c0_12 = arith.constant 0 : index
    %c0_13 = arith.constant 0 : index
    %c0_14 = arith.constant 0 : index
    %11 = vector.load %arg7[%c0_12, %c0_13, %c0_14] : memref<1x2x4xf32, #tpu.memory_space<vmem>>, vector<1x2x4xf32>
    %12 = vector.shape_cast %11 : vector<1x2x4xf32> to vector<2x4xf32>
    %c0_15 = arith.constant 0 : index
    %c0_16 = arith.constant 0 : index
    %c0_17 = arith.constant 0 : index
    %13 = vector.load %arg8[%c0_15, %c0_16, %c0_17] : memref<1x5x32xf32, #tpu.memory_space<vmem>>, vector<1x5x32xf32>
    %14 = vector.shape_cast %13 : vector<1x5x32xf32> to vector<5x32xf32>
    %c0_18 = arith.constant 0 : index
    %c0_19 = arith.constant 0 : index
    %c0_20 = arith.constant 0 : index
    %15 = vector.load %arg9[%c0_18, %c0_19, %c0_20] : memref<1x32x64xbf16, #tpu.memory_space<vmem>>, vector<1x32x64xbf16>
    %16 = vector.shape_cast %15 : vector<1x32x64xbf16> to vector<32x64xbf16>
    %c0_21 = arith.constant 0 : index
    %c0_22 = arith.constant 0 : index
    %c0_23 = arith.constant 0 : index
    %17 = vector.load %arg10[%c0_21, %c0_22, %c0_23] : memref<1x64x32xbf16, #tpu.memory_space<vmem>>, vector<1x64x32xbf16>
    %18 = vector.shape_cast %17 : vector<1x64x32xbf16> to vector<64x32xbf16>
    %c0_24 = arith.constant 0 : index
    %c0_25 = arith.constant 0 : index
    %c0_26 = arith.constant 0 : index
    %19 = vector.load %arg11[%c0_24, %c0_25, %c0_26] : memref<1x32x32xbf16, #tpu.memory_space<vmem>>, vector<1x32x32xbf16>
    %20 = vector.shape_cast %19 : vector<1x32x32xbf16> to vector<32x32xbf16>
    %c0_27 = arith.constant 0 : index
    %c0_28 = arith.constant 0 : index
    %c0_29 = arith.constant 0 : index
    %21 = vector.load %arg12[%c0_27, %c0_28, %c0_29] : memref<1x32x4xbf16, #tpu.memory_space<vmem>>, vector<1x32x4xbf16>
    %22 = vector.shape_cast %21 : vector<1x32x4xbf16> to vector<32x4xbf16>
    %c0_30 = arith.constant 0 : index
    %c0_31 = arith.constant 0 : index
    %c0_32 = arith.constant 0 : index
    %23 = vector.load %arg13[%c0_30, %c0_31, %c0_32] : memref<1x32x32xbf16, #tpu.memory_space<vmem>>, vector<1x32x32xbf16>
    %24 = vector.shape_cast %23 : vector<1x32x32xbf16> to vector<32x32xbf16>
    %c0_33 = arith.constant 0 : index
    %c0_34 = arith.constant 0 : index
    %c0_35 = arith.constant 0 : index
    %25 = vector.load %arg14[%c0_33, %c0_34, %c0_35] : memref<1x32x4xbf16, #tpu.memory_space<vmem>>, vector<1x32x4xbf16>
    %26 = vector.shape_cast %25 : vector<1x32x4xbf16> to vector<32x4xbf16>
    %c0_36 = arith.constant 0 : index
    %c0_37 = arith.constant 0 : index
    %c0_38 = arith.constant 0 : index
    %27 = vector.load %arg15[%c0_36, %c0_37, %c0_38] : memref<1x32x32xbf16, #tpu.memory_space<vmem>>, vector<1x32x32xbf16>
    %28 = vector.shape_cast %27 : vector<1x32x32xbf16> to vector<32x32xbf16>
    %c0_39 = arith.constant 0 : index
    %c0_40 = arith.constant 0 : index
    %c0_41 = arith.constant 0 : index
    %29 = vector.load %arg16[%c0_39, %c0_40, %c0_41] : memref<1x32x32xbf16, #tpu.memory_space<vmem>>, vector<1x32x32xbf16>
    %30 = vector.shape_cast %29 : vector<1x32x32xbf16> to vector<32x32xbf16>
    %c0_42 = arith.constant 0 : index
    %c0_43 = arith.constant 0 : index
    %c0_44 = arith.constant 0 : index
    %31 = vector.load %arg17[%c0_42, %c0_43, %c0_44] : memref<1x32x32xbf16, #tpu.memory_space<vmem>>, vector<1x32x32xbf16>
    %32 = vector.shape_cast %31 : vector<1x32x32xbf16> to vector<32x32xbf16>
    %c0_45 = arith.constant 0 : index
    %c0_46 = arith.constant 0 : index
    %c0_47 = arith.constant 0 : index
    %33 = vector.load %arg18[%c0_45, %c0_46, %c0_47] : memref<1x7x32xf32, #tpu.memory_space<vmem>>, vector<1x7x32xf32>
    %34 = vector.shape_cast %33 : vector<1x7x32xf32> to vector<7x32xf32>
    %c0_48 = arith.constant 0 : index
    %c0_49 = arith.constant 0 : index
    %c0_50 = arith.constant 0 : index
    %35 = vector.load %arg19[%c0_48, %c0_49, %c0_50] : memref<1x32x32xbf16, #tpu.memory_space<vmem>>, vector<1x32x32xbf16>
    %36 = vector.shape_cast %35 : vector<1x32x32xbf16> to vector<32x32xbf16>
    %c0_51 = arith.constant 0 : index
    %c0_52 = arith.constant 0 : index
    %c0_53 = arith.constant 0 : index
    %37 = vector.load %arg20[%c0_51, %c0_52, %c0_53] : memref<1x3x32xf32, #tpu.memory_space<vmem>>, vector<1x3x32xf32>
    %38 = vector.shape_cast %37 : vector<1x3x32xf32> to vector<3x32xf32>
    %c0_54 = arith.constant 0 : index
    %c0_55 = arith.constant 0 : index
    %c0_56 = arith.constant 0 : index
    %39 = vector.load %arg21[%c0_54, %c0_55, %c0_56] : memref<1x3x32xf32, #tpu.memory_space<vmem>>, vector<1x3x32xf32>
    %40 = vector.shape_cast %39 : vector<1x3x32xf32> to vector<3x32xf32>
    %c0_57 = arith.constant 0 : index
    %c0_58 = arith.constant 0 : index
    %c0_59 = arith.constant 0 : index
    %41 = vector.load %arg22[%c0_57, %c0_58, %c0_59] : memref<1x32x32xbf16, #tpu.memory_space<vmem>>, vector<1x32x32xbf16>
    %42 = vector.shape_cast %41 : vector<1x32x32xbf16> to vector<32x32xbf16>
    %c0_60 = arith.constant 0 : index
    %c0_61 = arith.constant 0 : index
    %c0_62 = arith.constant 0 : index
    %43 = vector.load %arg23[%c0_60, %c0_61, %c0_62] : memref<1x32x32xbf16, #tpu.memory_space<vmem>>, vector<1x32x32xbf16>
    %44 = vector.shape_cast %43 : vector<1x32x32xbf16> to vector<32x32xbf16>
    %c0_63 = arith.constant 0 : index
    %c0_64 = arith.constant 0 : index
    %c0_65 = arith.constant 0 : index
    %45 = vector.load %arg24[%c0_63, %c0_64, %c0_65] : memref<1x32x64xbf16, #tpu.memory_space<vmem>>, vector<1x32x64xbf16>
    %46 = vector.shape_cast %45 : vector<1x32x64xbf16> to vector<32x64xbf16>
    %c0_66 = arith.constant 0 : index
    %c0_67 = arith.constant 0 : index
    %c0_68 = arith.constant 0 : index
    %47 = vector.load %arg25[%c0_66, %c0_67, %c0_68] : memref<1x64x32xbf16, #tpu.memory_space<vmem>>, vector<1x64x32xbf16>
    %48 = vector.shape_cast %47 : vector<1x64x32xbf16> to vector<64x32xbf16>
    %c0_69 = arith.constant 0 : index
    %c0_70 = arith.constant 0 : index
    %49 = vector.load %arg4[%c0_69, %c0_70] : memref<4x32xf32, #tpu.memory_space<vmem>>, vector<4x32xf32>
    %50 = vector.extract_strided_slice %8 {offsets = [0, 0], sizes = [1, 32], strides = [1, 1]} : vector<19x32xf32> to vector<1x32xf32>
    %51 = vector.extract_strided_slice %8 {offsets = [1, 0], sizes = [1, 32], strides = [1, 1]} : vector<19x32xf32> to vector<1x32xf32>
    %cst_71 = arith.constant dense<0.000000e+00> : vector<1x8xf32>
    %52 = vector.multi_reduction <add>, %3, %cst_71 [2] : vector<1x8x32xf32> to vector<1x8xf32>
    %53 = vector.shape_cast %52 : vector<1x8xf32> to vector<1x8x1xf32>
    %cst_72 = arith.constant 3.200000e+01 : f32
    %54 = vector.broadcast %cst_72 : f32 to vector<1x8x1xf32>
    %55 = arith.divf %53, %54 : vector<1x8x1xf32>
    %56 = vector.broadcast %55 : vector<1x8x1xf32> to vector<1x8x32xf32>
    %57 = arith.subf %3, %56 : vector<1x8x32xf32>
    %58 = arith.mulf %57, %57 : vector<1x8x32xf32>
    %cst_73 = arith.constant dense<0.000000e+00> : vector<1x8xf32>
    %59 = vector.multi_reduction <add>, %58, %cst_73 [2] : vector<1x8x32xf32> to vector<1x8xf32>
    %60 = vector.shape_cast %59 : vector<1x8xf32> to vector<1x8x1xf32>
    %cst_74 = arith.constant 3.200000e+01 : f32
    %61 = vector.broadcast %cst_74 : f32 to vector<1x8x1xf32>
    %62 = arith.divf %60, %61 : vector<1x8x1xf32>
    %63 = vector.broadcast %55 : vector<1x8x1xf32> to vector<1x8x32xf32>
    %64 = arith.subf %3, %63 : vector<1x8x32xf32>
    %cst_75 = arith.constant 9.99999974E-6 : f32
    %65 = vector.broadcast %cst_75 : f32 to vector<1x8x1xf32>
    %66 = arith.addf %62, %65 : vector<1x8x1xf32>
    %67 = math.rsqrt %66 : vector<1x8x1xf32>
    %68 = vector.broadcast %67 : vector<1x8x1xf32> to vector<1x8x32xf32>
    %69 = arith.mulf %64, %68 : vector<1x8x32xf32>
    %70 = vector.shape_cast %50 : vector<1x32xf32> to vector<1x1x32xf32>
    %71 = vector.broadcast %70 : vector<1x1x32xf32> to vector<1x8x32xf32>
    %72 = arith.mulf %69, %71 : vector<1x8x32xf32>
    %73 = vector.shape_cast %51 : vector<1x32xf32> to vector<1x1x32xf32>
    %74 = vector.broadcast %73 : vector<1x1x32xf32> to vector<1x8x32xf32>
    %75 = arith.addf %72, %74 : vector<1x8x32xf32>
    %76 = vector.extract_strided_slice %10 {offsets = [0, 0], sizes = [1, 64], strides = [1, 1]} : vector<2x64xf32> to vector<1x64xf32>
    %77 = vector.extract_strided_slice %8 {offsets = [2, 0], sizes = [1, 32], strides = [1, 1]} : vector<19x32xf32> to vector<1x32xf32>
    %78 = vector.shape_cast %75 : vector<1x8x32xf32> to vector<8x32xf32>
    %79 = arith.truncf %78 : vector<8x32xf32> to vector<8x32xbf16>
    %cst_76 = arith.constant dense<0.000000e+00> : vector<8x64xf32>
    %80 = tpu.matmul %79, %16, %cst_76 {dimension_numbers = #tpu.dot_dimension_numbers<[1], [0], [0], [1], [0, 0, 1, 1], [], []>} : vector<8x32xbf16>, vector<32x64xbf16>, vector<8x64xf32> -> vector<8x64xf32>
    %81 = vector.broadcast %76 : vector<1x64xf32> to vector<8x64xf32>
    %82 = arith.addf %80, %81 : vector<8x64xf32>
    %83 = vector.shape_cast %82 : vector<8x64xf32> to vector<1x8x64xf32>
    %84 = arith.negf %83 : vector<1x8x64xf32>
    %85 = math.exp %84 : vector<1x8x64xf32>
    %cst_77 = arith.constant 1.000000e+00 : f32
    %86 = vector.broadcast %cst_77 : f32 to vector<1x8x64xf32>
    %87 = arith.addf %86, %85 : vector<1x8x64xf32>
    %88 = arith.divf %86, %87 : vector<1x8x64xf32>
    %89 = arith.mulf %83, %88 : vector<1x8x64xf32>
    %90 = vector.shape_cast %89 : vector<1x8x64xf32> to vector<8x64xf32>
    %91 = arith.truncf %90 : vector<8x64xf32> to vector<8x64xbf16>
    %cst_78 = arith.constant dense<0.000000e+00> : vector<8x32xf32>
    %92 = tpu.matmul %91, %18, %cst_78 {dimension_numbers = #tpu.dot_dimension_numbers<[1], [0], [0], [1], [0, 0, 1, 1], [], []>} : vector<8x64xbf16>, vector<64x32xbf16>, vector<8x32xf32> -> vector<8x32xf32>
    %93 = vector.broadcast %77 : vector<1x32xf32> to vector<8x32xf32>
    %94 = arith.addf %92, %93 : vector<8x32xf32>
    %95 = vector.shape_cast %94 : vector<8x32xf32> to vector<1x8x32xf32>
    %cst_79 = arith.constant 5.000000e-01 : f32
    %96 = vector.broadcast %cst_79 : f32 to vector<1x8x32xf32>
    %97 = arith.mulf %96, %95 : vector<1x8x32xf32>
    %98 = arith.addf %3, %97 : vector<1x8x32xf32>
    %99 = vector.extract_strided_slice %8 {offsets = [3, 0], sizes = [1, 32], strides = [1, 1]} : vector<19x32xf32> to vector<1x32xf32>
    %100 = vector.extract_strided_slice %8 {offsets = [4, 0], sizes = [1, 32], strides = [1, 1]} : vector<19x32xf32> to vector<1x32xf32>
    %cst_80 = arith.constant dense<0.000000e+00> : vector<1x8xf32>
    %101 = vector.multi_reduction <add>, %98, %cst_80 [2] : vector<1x8x32xf32> to vector<1x8xf32>
    %102 = vector.shape_cast %101 : vector<1x8xf32> to vector<1x8x1xf32>
    %cst_81 = arith.constant 3.200000e+01 : f32
    %103 = vector.broadcast %cst_81 : f32 to vector<1x8x1xf32>
    %104 = arith.divf %102, %103 : vector<1x8x1xf32>
    %105 = vector.broadcast %104 : vector<1x8x1xf32> to vector<1x8x32xf32>
    %106 = arith.subf %98, %105 : vector<1x8x32xf32>
    %107 = arith.mulf %106, %106 : vector<1x8x32xf32>
    %cst_82 = arith.constant dense<0.000000e+00> : vector<1x8xf32>
    %108 = vector.multi_reduction <add>, %107, %cst_82 [2] : vector<1x8x32xf32> to vector<1x8xf32>
    %109 = vector.shape_cast %108 : vector<1x8xf32> to vector<1x8x1xf32>
    %cst_83 = arith.constant 3.200000e+01 : f32
    %110 = vector.broadcast %cst_83 : f32 to vector<1x8x1xf32>
    %111 = arith.divf %109, %110 : vector<1x8x1xf32>
    %112 = vector.broadcast %104 : vector<1x8x1xf32> to vector<1x8x32xf32>
    %113 = arith.subf %98, %112 : vector<1x8x32xf32>
    %cst_84 = arith.constant 9.99999974E-6 : f32
    %114 = vector.broadcast %cst_84 : f32 to vector<1x8x1xf32>
    %115 = arith.addf %111, %114 : vector<1x8x1xf32>
    %116 = math.rsqrt %115 : vector<1x8x1xf32>
    %117 = vector.broadcast %116 : vector<1x8x1xf32> to vector<1x8x32xf32>
    %118 = arith.mulf %113, %117 : vector<1x8x32xf32>
    %119 = vector.shape_cast %99 : vector<1x32xf32> to vector<1x1x32xf32>
    %120 = vector.broadcast %119 : vector<1x1x32xf32> to vector<1x8x32xf32>
    %121 = arith.mulf %118, %120 : vector<1x8x32xf32>
    %122 = vector.shape_cast %100 : vector<1x32xf32> to vector<1x1x32xf32>
    %123 = vector.broadcast %122 : vector<1x1x32xf32> to vector<1x8x32xf32>
    %124 = arith.addf %121, %123 : vector<1x8x32xf32>
    %125 = vector.extract_strided_slice %8 {offsets = [5, 0], sizes = [1, 32], strides = [1, 1]} : vector<19x32xf32> to vector<1x32xf32>
    %126 = vector.extract_strided_slice %12 {offsets = [0, 0], sizes = [1, 4], strides = [1, 1]} : vector<2x4xf32> to vector<1x4xf32>
    %127 = vector.extract_strided_slice %8 {offsets = [6, 0], sizes = [1, 32], strides = [1, 1]} : vector<19x32xf32> to vector<1x32xf32>
    %128 = vector.extract_strided_slice %12 {offsets = [1, 0], sizes = [1, 4], strides = [1, 1]} : vector<2x4xf32> to vector<1x4xf32>
    %129 = vector.extract_strided_slice %8 {offsets = [7, 0], sizes = [1, 32], strides = [1, 1]} : vector<19x32xf32> to vector<1x32xf32>
    %130 = vector.shape_cast %124 : vector<1x8x32xf32> to vector<8x32xf32>
    %131 = arith.truncf %130 : vector<8x32xf32> to vector<8x32xbf16>
    %cst_85 = arith.constant dense<0.000000e+00> : vector<8x32xf32>
    %132 = tpu.matmul %131, %20, %cst_85 {dimension_numbers = #tpu.dot_dimension_numbers<[1], [0], [0], [1], [0, 0, 1, 1], [], []>} : vector<8x32xbf16>, vector<32x32xbf16>, vector<8x32xf32> -> vector<8x32xf32>
    %133 = vector.broadcast %125 : vector<1x32xf32> to vector<8x32xf32>
    %134 = arith.addf %132, %133 : vector<8x32xf32>
    %135 = vector.shape_cast %134 : vector<8x32xf32> to vector<1x8x32xf32>
    %136 = vector.shape_cast %124 : vector<1x8x32xf32> to vector<8x32xf32>
    %137 = arith.truncf %136 : vector<8x32xf32> to vector<8x32xbf16>
    %cst_86 = arith.constant dense<0.000000e+00> : vector<8x32xf32>
    %138 = tpu.matmul %137, %24, %cst_86 {dimension_numbers = #tpu.dot_dimension_numbers<[1], [0], [0], [1], [0, 0, 1, 1], [], []>} : vector<8x32xbf16>, vector<32x32xbf16>, vector<8x32xf32> -> vector<8x32xf32>
    %139 = vector.broadcast %127 : vector<1x32xf32> to vector<8x32xf32>
    %140 = arith.addf %138, %139 : vector<8x32xf32>
    %141 = vector.shape_cast %140 : vector<8x32xf32> to vector<1x8x32xf32>
    %142 = vector.shape_cast %135 : vector<1x8x32xf32> to vector<8x32xf32>
    %143 = arith.truncf %142 : vector<8x32xf32> to vector<8x32xbf16>
    %cst_87 = arith.constant dense<0.000000e+00> : vector<8x4xf32>
    %144 = tpu.matmul %143, %22, %cst_87 {dimension_numbers = #tpu.dot_dimension_numbers<[1], [0], [0], [1], [0, 0, 1, 1], [], []>} : vector<8x32xbf16>, vector<32x4xbf16>, vector<8x4xf32> -> vector<8x4xf32>
    %145 = vector.broadcast %126 : vector<1x4xf32> to vector<8x4xf32>
    %146 = arith.addf %144, %145 : vector<8x4xf32>
    %147 = vector.shape_cast %146 : vector<8x4xf32> to vector<1x8x4xf32>
    %cst_88 = arith.constant 0.353553385 : f32
    %148 = vector.broadcast %cst_88 : f32 to vector<1x8x4xf32>
    %149 = arith.mulf %147, %148 : vector<1x8x4xf32>
    %cst_89 = arith.constant -3.40282347E+38 : f32
    %150 = vector.shape_cast %6 : vector<1x8x1xi1> to vector<1x8x1xi1>
    %151 = vector.broadcast %150 : vector<1x8x1xi1> to vector<1x8x4xi1>
    %152 = vector.broadcast %cst_89 : f32 to vector<1x8x4xf32>
    %153 = arith.select %151, %152, %149 : vector<1x8x4xi1>, vector<1x8x4xf32>
    %cst_90 = arith.constant dense<0xFF800000> : vector<1x4xf32>
    %154 = vector.multi_reduction <maximumf>, %153, %cst_90 [1] : vector<1x8x4xf32> to vector<1x4xf32>
    %155 = vector.shape_cast %154 : vector<1x4xf32> to vector<1x1x4xf32>
    %156 = vector.broadcast %155 : vector<1x1x4xf32> to vector<1x8x4xf32>
    %157 = arith.subf %153, %156 : vector<1x8x4xf32>
    %158 = math.exp %157 : vector<1x8x4xf32>
    %cst_91 = arith.constant dense<0.000000e+00> : vector<1x4xf32>
    %159 = vector.multi_reduction <add>, %158, %cst_91 [1] : vector<1x8x4xf32> to vector<1x4xf32>
    %160 = vector.shape_cast %159 : vector<1x4xf32> to vector<1x1x4xf32>
    %161 = tpu.reciprocal %160 {approx = true} : vector<1x1x4xf32> -> vector<1x1x4xf32>
    %162 = vector.broadcast %161 : vector<1x1x4xf32> to vector<1x8x4xf32>
    %163 = arith.mulf %158, %162 : vector<1x8x4xf32>
    %164 = vector.shape_cast %163 : vector<1x8x4xf32> to vector<8x4xf32>
    %165 = arith.truncf %164 : vector<8x4xf32> to vector<8x4xbf16>
    %166 = vector.shape_cast %135 : vector<1x8x32xf32> to vector<8x32xf32>
    %167 = arith.truncf %166 : vector<8x32xf32> to vector<8x32xbf16>
    %cst_92 = arith.constant dense<0.000000e+00> : vector<4x32xf32>
    %168 = tpu.matmul %165, %167, %cst_92 {dimension_numbers = #tpu.dot_dimension_numbers<[0], [0], [1], [1], [0, 1, 1, 1], [], []>} : vector<8x4xbf16>, vector<8x32xbf16>, vector<4x32xf32> -> vector<4x32xf32>
    %169 = arith.mulf %168, %49 : vector<4x32xf32>
    %cst_93 = arith.constant dense<0.000000e+00> : vector<32xf32>
    %170 = vector.multi_reduction <add>, %169, %cst_93 [0] : vector<4x32xf32> to vector<32xf32>
    %171 = vector.shape_cast %170 : vector<32xf32> to vector<1x32xf32>
    %172 = vector.shape_cast %171 : vector<1x32xf32> to vector<1x1x32xf32>
    %173 = vector.broadcast %172 : vector<1x1x32xf32> to vector<1x8x32xf32>
    %174 = arith.mulf %141, %173 : vector<1x8x32xf32>
    %175 = vector.shape_cast %174 : vector<1x8x32xf32> to vector<8x32xf32>
    %176 = arith.truncf %175 : vector<8x32xf32> to vector<8x32xbf16>
    %cst_94 = arith.constant dense<0.000000e+00> : vector<8x4xf32>
    %177 = tpu.matmul %176, %26, %cst_94 {dimension_numbers = #tpu.dot_dimension_numbers<[1], [0], [0], [1], [0, 0, 1, 1], [], []>} : vector<8x32xbf16>, vector<32x4xbf16>, vector<8x4xf32> -> vector<8x4xf32>
    %178 = vector.broadcast %128 : vector<1x4xf32> to vector<8x4xf32>
    %179 = arith.addf %177, %178 : vector<8x4xf32>
    %180 = vector.shape_cast %179 : vector<8x4xf32> to vector<1x8x4xf32>
    %cst_95 = arith.constant 0.353553385 : f32
    %181 = vector.broadcast %cst_95 : f32 to vector<1x8x4xf32>
    %182 = arith.mulf %180, %181 : vector<1x8x4xf32>
    %cst_96 = arith.constant -3.40282347E+38 : f32
    %183 = vector.shape_cast %6 : vector<1x8x1xi1> to vector<1x8x1xi1>
    %184 = vector.broadcast %183 : vector<1x8x1xi1> to vector<1x8x4xi1>
    %185 = vector.broadcast %cst_96 : f32 to vector<1x8x4xf32>
    %186 = arith.select %184, %185, %182 : vector<1x8x4xi1>, vector<1x8x4xf32>
    %cst_97 = arith.constant dense<0xFF800000> : vector<1x4xf32>
    %187 = vector.multi_reduction <maximumf>, %186, %cst_97 [1] : vector<1x8x4xf32> to vector<1x4xf32>
    %188 = vector.shape_cast %187 : vector<1x4xf32> to vector<1x1x4xf32>
    %189 = vector.broadcast %188 : vector<1x1x4xf32> to vector<1x8x4xf32>
    %190 = arith.subf %186, %189 : vector<1x8x4xf32>
    %191 = math.exp %190 : vector<1x8x4xf32>
    %cst_98 = arith.constant dense<0.000000e+00> : vector<1x4xf32>
    %192 = vector.multi_reduction <add>, %191, %cst_98 [1] : vector<1x8x4xf32> to vector<1x4xf32>
    %193 = vector.shape_cast %192 : vector<1x4xf32> to vector<1x1x4xf32>
    %194 = tpu.reciprocal %193 {approx = true} : vector<1x1x4xf32> -> vector<1x1x4xf32>
    %195 = vector.broadcast %194 : vector<1x1x4xf32> to vector<1x8x4xf32>
    %196 = arith.mulf %191, %195 : vector<1x8x4xf32>
    %197 = vector.shape_cast %196 : vector<1x8x4xf32> to vector<8x4xf32>
    %198 = arith.truncf %197 : vector<8x4xf32> to vector<8x4xbf16>
    %199 = vector.shape_cast %174 : vector<1x8x32xf32> to vector<8x32xf32>
    %200 = arith.truncf %199 : vector<8x32xf32> to vector<8x32xbf16>
    %cst_99 = arith.constant dense<0.000000e+00> : vector<4x32xf32>
    %201 = tpu.matmul %198, %200, %cst_99 {dimension_numbers = #tpu.dot_dimension_numbers<[0], [0], [1], [1], [0, 1, 1, 1], [], []>} : vector<8x4xbf16>, vector<8x32xbf16>, vector<4x32xf32> -> vector<4x32xf32>
    %202 = arith.mulf %201, %49 : vector<4x32xf32>
    %cst_100 = arith.constant dense<0.000000e+00> : vector<32xf32>
    %203 = vector.multi_reduction <add>, %202, %cst_100 [0] : vector<4x32xf32> to vector<32xf32>
    %204 = vector.shape_cast %203 : vector<32xf32> to vector<1x32xf32>
    %205 = vector.shape_cast %204 : vector<1x32xf32> to vector<1x1x32xf32>
    %206 = vector.broadcast %205 : vector<1x1x32xf32> to vector<1x8x32xf32>
    %207 = arith.mulf %206, %135 : vector<1x8x32xf32>
    %208 = vector.shape_cast %207 : vector<1x8x32xf32> to vector<8x32xf32>
    %209 = arith.truncf %208 : vector<8x32xf32> to vector<8x32xbf16>
    %cst_101 = arith.constant dense<0.000000e+00> : vector<8x32xf32>
    %210 = tpu.matmul %209, %28, %cst_101 {dimension_numbers = #tpu.dot_dimension_numbers<[1], [0], [0], [1], [0, 0, 1, 1], [], []>} : vector<8x32xbf16>, vector<32x32xbf16>, vector<8x32xf32> -> vector<8x32xf32>
    %211 = vector.broadcast %129 : vector<1x32xf32> to vector<8x32xf32>
    %212 = arith.addf %210, %211 : vector<8x32xf32>
    %213 = vector.shape_cast %212 : vector<8x32xf32> to vector<1x8x32xf32>
    %214 = arith.addf %213, %135 : vector<1x8x32xf32>
    %215 = vector.extract_strided_slice %8 {offsets = [8, 0], sizes = [1, 32], strides = [1, 1]} : vector<19x32xf32> to vector<1x32xf32>
    %216 = vector.extract_strided_slice %8 {offsets = [9, 0], sizes = [1, 32], strides = [1, 1]} : vector<19x32xf32> to vector<1x32xf32>
    %cst_102 = arith.constant dense<0.000000e+00> : vector<1x8xf32>
    %217 = vector.multi_reduction <add>, %98, %cst_102 [2] : vector<1x8x32xf32> to vector<1x8xf32>
    %218 = vector.shape_cast %217 : vector<1x8xf32> to vector<1x8x1xf32>
    %cst_103 = arith.constant 3.200000e+01 : f32
    %219 = vector.broadcast %cst_103 : f32 to vector<1x8x1xf32>
    %220 = arith.divf %218, %219 : vector<1x8x1xf32>
    %221 = vector.broadcast %220 : vector<1x8x1xf32> to vector<1x8x32xf32>
    %222 = arith.subf %98, %221 : vector<1x8x32xf32>
    %223 = arith.mulf %222, %222 : vector<1x8x32xf32>
    %cst_104 = arith.constant dense<0.000000e+00> : vector<1x8xf32>
    %224 = vector.multi_reduction <add>, %223, %cst_104 [2] : vector<1x8x32xf32> to vector<1x8xf32>
    %225 = vector.shape_cast %224 : vector<1x8xf32> to vector<1x8x1xf32>
    %cst_105 = arith.constant 3.200000e+01 : f32
    %226 = vector.broadcast %cst_105 : f32 to vector<1x8x1xf32>
    %227 = arith.divf %225, %226 : vector<1x8x1xf32>
    %228 = vector.broadcast %220 : vector<1x8x1xf32> to vector<1x8x32xf32>
    %229 = arith.subf %98, %228 : vector<1x8x32xf32>
    %cst_106 = arith.constant 9.99999974E-6 : f32
    %230 = vector.broadcast %cst_106 : f32 to vector<1x8x1xf32>
    %231 = arith.addf %227, %230 : vector<1x8x1xf32>
    %232 = math.rsqrt %231 : vector<1x8x1xf32>
    %233 = vector.broadcast %232 : vector<1x8x1xf32> to vector<1x8x32xf32>
    %234 = arith.mulf %229, %233 : vector<1x8x32xf32>
    %235 = vector.shape_cast %215 : vector<1x32xf32> to vector<1x1x32xf32>
    %236 = vector.broadcast %235 : vector<1x1x32xf32> to vector<1x8x32xf32>
    %237 = arith.mulf %234, %236 : vector<1x8x32xf32>
    %238 = vector.shape_cast %216 : vector<1x32xf32> to vector<1x1x32xf32>
    %239 = vector.broadcast %238 : vector<1x1x32xf32> to vector<1x8x32xf32>
    %240 = arith.addf %237, %239 : vector<1x8x32xf32>
    %241 = vector.extract_strided_slice %14 {offsets = [0, 0], sizes = [1, 32], strides = [1, 1]} : vector<5x32xf32> to vector<1x32xf32>
    %242 = vector.shape_cast %240 : vector<1x8x32xf32> to vector<8x32xf32>
    %243 = arith.truncf %242 : vector<8x32xf32> to vector<8x32xbf16>
    %cst_107 = arith.constant dense<0.000000e+00> : vector<8x32xf32>
    %244 = tpu.matmul %243, %30, %cst_107 {dimension_numbers = #tpu.dot_dimension_numbers<[1], [0], [0], [1], [0, 0, 1, 1], [], []>} : vector<8x32xbf16>, vector<32x32xbf16>, vector<8x32xf32> -> vector<8x32xf32>
    %245 = vector.broadcast %241 : vector<1x32xf32> to vector<8x32xf32>
    %246 = arith.addf %244, %245 : vector<8x32xf32>
    %247 = vector.shape_cast %246 : vector<8x32xf32> to vector<1x8x32xf32>
    %248 = arith.mulf %247, %247 : vector<1x8x32xf32>
    %249 = arith.mulf %247, %248 : vector<1x8x32xf32>
    %cst_108 = arith.constant 4.471500e-02 : f32
    %250 = vector.broadcast %cst_108 : f32 to vector<1x8x32xf32>
    %251 = arith.mulf %250, %249 : vector<1x8x32xf32>
    %252 = arith.addf %247, %251 : vector<1x8x32xf32>
    %cst_109 = arith.constant 0.797884583 : f32
    %253 = vector.broadcast %cst_109 : f32 to vector<1x8x32xf32>
    %254 = arith.mulf %253, %252 : vector<1x8x32xf32>
    %255 = math.tanh %254 : vector<1x8x32xf32>
    %cst_110 = arith.constant 1.000000e+00 : f32
    %256 = vector.broadcast %cst_110 : f32 to vector<1x8x32xf32>
    %257 = arith.addf %256, %255 : vector<1x8x32xf32>
    %cst_111 = arith.constant 5.000000e-01 : f32
    %258 = vector.broadcast %cst_111 : f32 to vector<1x8x32xf32>
    %259 = arith.mulf %258, %257 : vector<1x8x32xf32>
    %260 = arith.mulf %247, %259 : vector<1x8x32xf32>
    %261 = vector.extract_strided_slice %14 {offsets = [1, 0], sizes = [1, 32], strides = [1, 1]} : vector<5x32xf32> to vector<1x32xf32>
    %262 = vector.shape_cast %240 : vector<1x8x32xf32> to vector<8x32xf32>
    %263 = arith.truncf %262 : vector<8x32xf32> to vector<8x32xbf16>
    %cst_112 = arith.constant dense<0.000000e+00> : vector<8x32xf32>
    %264 = tpu.matmul %263, %32, %cst_112 {dimension_numbers = #tpu.dot_dimension_numbers<[1], [0], [0], [1], [0, 0, 1, 1], [], []>} : vector<8x32xbf16>, vector<32x32xbf16>, vector<8x32xf32> -> vector<8x32xf32>
    %265 = vector.broadcast %261 : vector<1x32xf32> to vector<8x32xf32>
    %266 = arith.addf %264, %265 : vector<8x32xf32>
    %267 = vector.shape_cast %266 : vector<8x32xf32> to vector<1x8x32xf32>
    %268 = arith.mulf %267, %267 : vector<1x8x32xf32>
    %269 = arith.mulf %267, %268 : vector<1x8x32xf32>
    %cst_113 = arith.constant 4.471500e-02 : f32
    %270 = vector.broadcast %cst_113 : f32 to vector<1x8x32xf32>
    %271 = arith.mulf %270, %269 : vector<1x8x32xf32>
    %272 = arith.addf %267, %271 : vector<1x8x32xf32>
    %cst_114 = arith.constant 0.797884583 : f32
    %273 = vector.broadcast %cst_114 : f32 to vector<1x8x32xf32>
    %274 = arith.mulf %273, %272 : vector<1x8x32xf32>
    %275 = math.tanh %274 : vector<1x8x32xf32>
    %cst_115 = arith.constant 1.000000e+00 : f32
    %276 = vector.broadcast %cst_115 : f32 to vector<1x8x32xf32>
    %277 = arith.addf %276, %275 : vector<1x8x32xf32>
    %cst_116 = arith.constant 5.000000e-01 : f32
    %278 = vector.broadcast %cst_116 : f32 to vector<1x8x32xf32>
    %279 = arith.mulf %278, %277 : vector<1x8x32xf32>
    %280 = arith.mulf %267, %279 : vector<1x8x32xf32>
    %281 = vector.extract_strided_slice %14 {offsets = [2, 0], sizes = [1, 32], strides = [1, 1]} : vector<5x32xf32> to vector<1x32xf32>
    %282 = vector.extract_strided_slice %14 {offsets = [3, 0], sizes = [1, 32], strides = [1, 1]} : vector<5x32xf32> to vector<1x32xf32>
    %cst_117 = arith.constant dense<0.000000e+00> : vector<1x8xf32>
    %283 = vector.multi_reduction <add>, %280, %cst_117 [2] : vector<1x8x32xf32> to vector<1x8xf32>
    %284 = vector.shape_cast %283 : vector<1x8xf32> to vector<1x8x1xf32>
    %cst_118 = arith.constant 3.200000e+01 : f32
    %285 = vector.broadcast %cst_118 : f32 to vector<1x8x1xf32>
    %286 = arith.divf %284, %285 : vector<1x8x1xf32>
    %287 = vector.broadcast %286 : vector<1x8x1xf32> to vector<1x8x32xf32>
    %288 = arith.subf %280, %287 : vector<1x8x32xf32>
    %289 = arith.mulf %288, %288 : vector<1x8x32xf32>
    %cst_119 = arith.constant dense<0.000000e+00> : vector<1x8xf32>
    %290 = vector.multi_reduction <add>, %289, %cst_119 [2] : vector<1x8x32xf32> to vector<1x8xf32>
    %291 = vector.shape_cast %290 : vector<1x8xf32> to vector<1x8x1xf32>
    %cst_120 = arith.constant 3.200000e+01 : f32
    %292 = vector.broadcast %cst_120 : f32 to vector<1x8x1xf32>
    %293 = arith.divf %291, %292 : vector<1x8x1xf32>
    %294 = vector.broadcast %286 : vector<1x8x1xf32> to vector<1x8x32xf32>
    %295 = arith.subf %280, %294 : vector<1x8x32xf32>
    %cst_121 = arith.constant 9.99999974E-6 : f32
    %296 = vector.broadcast %cst_121 : f32 to vector<1x8x1xf32>
    %297 = arith.addf %293, %296 : vector<1x8x1xf32>
    %298 = math.rsqrt %297 : vector<1x8x1xf32>
    %299 = vector.broadcast %298 : vector<1x8x1xf32> to vector<1x8x32xf32>
    %300 = arith.mulf %295, %299 : vector<1x8x32xf32>
    %301 = vector.shape_cast %281 : vector<1x32xf32> to vector<1x1x32xf32>
    %302 = vector.broadcast %301 : vector<1x1x32xf32> to vector<1x8x32xf32>
    %303 = arith.mulf %300, %302 : vector<1x8x32xf32>
    %304 = vector.shape_cast %282 : vector<1x32xf32> to vector<1x1x32xf32>
    %305 = vector.broadcast %304 : vector<1x1x32xf32> to vector<1x8x32xf32>
    %306 = arith.addf %303, %305 : vector<1x8x32xf32>
    %307 = vector.extract_strided_slice %14 {offsets = [4, 0], sizes = [1, 32], strides = [1, 1]} : vector<5x32xf32> to vector<1x32xf32>
    %308 = vector.extract_strided_slice %34 {offsets = [3, 0], sizes = [1, 32], strides = [1, 1]} : vector<7x32xf32> to vector<1x32xf32>
    %309 = vector.shape_cast %308 : vector<1x32xf32> to vector<32xf32>
    %310 = vector.shape_cast %309 : vector<32xf32> to vector<1x1x32xf32>
    %311 = vector.broadcast %310 : vector<1x1x32xf32> to vector<1x8x32xf32>
    %312 = arith.mulf %306, %311 : vector<1x8x32xf32>
    %cst_122 = arith.constant 0.000000e+00 : f32
    %313 = vector.broadcast %cst_122 : f32 to vector<1x1x32xf32>
    %314 = vector.extract_strided_slice %306 {offsets = [0, 1, 0], sizes = [1, 7, 32], strides = [1, 1, 1]} : vector<1x8x32xf32> to vector<1x7x32xf32>
    %315 = tpu.concatenate %314, %313 in 1 : vector<1x7x32xf32>, vector<1x1x32xf32> -> vector<1x8x32xf32>
    %316 = vector.extract_strided_slice %34 {offsets = [4, 0], sizes = [1, 32], strides = [1, 1]} : vector<7x32xf32> to vector<1x32xf32>
    %317 = vector.shape_cast %316 : vector<1x32xf32> to vector<32xf32>
    %318 = vector.shape_cast %317 : vector<32xf32> to vector<1x1x32xf32>
    %319 = vector.broadcast %318 : vector<1x1x32xf32> to vector<1x8x32xf32>
    %320 = arith.mulf %315, %319 : vector<1x8x32xf32>
    %321 = arith.addf %312, %320 : vector<1x8x32xf32>
    %322 = vector.extract_strided_slice %306 {offsets = [0, 0, 0], sizes = [1, 7, 32], strides = [1, 1, 1]} : vector<1x8x32xf32> to vector<1x7x32xf32>
    %323 = tpu.concatenate %313, %322 in 1 : vector<1x1x32xf32>, vector<1x7x32xf32> -> vector<1x8x32xf32>
    %324 = vector.extract_strided_slice %34 {offsets = [2, 0], sizes = [1, 32], strides = [1, 1]} : vector<7x32xf32> to vector<1x32xf32>
    %325 = vector.shape_cast %324 : vector<1x32xf32> to vector<32xf32>
    %326 = vector.shape_cast %325 : vector<32xf32> to vector<1x1x32xf32>
    %327 = vector.broadcast %326 : vector<1x1x32xf32> to vector<1x8x32xf32>
    %328 = arith.mulf %323, %327 : vector<1x8x32xf32>
    %329 = arith.addf %321, %328 : vector<1x8x32xf32>
    %cst_123 = arith.constant 0.000000e+00 : f32
    %330 = vector.broadcast %cst_123 : f32 to vector<1x2x32xf32>
    %331 = vector.extract_strided_slice %306 {offsets = [0, 2, 0], sizes = [1, 6, 32], strides = [1, 1, 1]} : vector<1x8x32xf32> to vector<1x6x32xf32>
    %332 = tpu.concatenate %331, %330 in 1 : vector<1x6x32xf32>, vector<1x2x32xf32> -> vector<1x8x32xf32>
    %333 = vector.extract_strided_slice %34 {offsets = [5, 0], sizes = [1, 32], strides = [1, 1]} : vector<7x32xf32> to vector<1x32xf32>
    %334 = vector.shape_cast %333 : vector<1x32xf32> to vector<32xf32>
    %335 = vector.shape_cast %334 : vector<32xf32> to vector<1x1x32xf32>
    %336 = vector.broadcast %335 : vector<1x1x32xf32> to vector<1x8x32xf32>
    %337 = arith.mulf %332, %336 : vector<1x8x32xf32>
    %338 = arith.addf %329, %337 : vector<1x8x32xf32>
    %339 = vector.extract_strided_slice %306 {offsets = [0, 0, 0], sizes = [1, 6, 32], strides = [1, 1, 1]} : vector<1x8x32xf32> to vector<1x6x32xf32>
    %340 = tpu.concatenate %330, %339 in 1 : vector<1x2x32xf32>, vector<1x6x32xf32> -> vector<1x8x32xf32>
    %341 = vector.extract_strided_slice %34 {offsets = [1, 0], sizes = [1, 32], strides = [1, 1]} : vector<7x32xf32> to vector<1x32xf32>
    %342 = vector.shape_cast %341 : vector<1x32xf32> to vector<32xf32>
    %343 = vector.shape_cast %342 : vector<32xf32> to vector<1x1x32xf32>
    %344 = vector.broadcast %343 : vector<1x1x32xf32> to vector<1x8x32xf32>
    %345 = arith.mulf %340, %344 : vector<1x8x32xf32>
    %346 = arith.addf %338, %345 : vector<1x8x32xf32>
    %cst_124 = arith.constant 0.000000e+00 : f32
    %347 = vector.broadcast %cst_124 : f32 to vector<1x3x32xf32>
    %348 = vector.extract_strided_slice %306 {offsets = [0, 3, 0], sizes = [1, 5, 32], strides = [1, 1, 1]} : vector<1x8x32xf32> to vector<1x5x32xf32>
    %349 = tpu.concatenate %348, %347 in 1 : vector<1x5x32xf32>, vector<1x3x32xf32> -> vector<1x8x32xf32>
    %350 = vector.extract_strided_slice %34 {offsets = [6, 0], sizes = [1, 32], strides = [1, 1]} : vector<7x32xf32> to vector<1x32xf32>
    %351 = vector.shape_cast %350 : vector<1x32xf32> to vector<32xf32>
    %352 = vector.shape_cast %351 : vector<32xf32> to vector<1x1x32xf32>
    %353 = vector.broadcast %352 : vector<1x1x32xf32> to vector<1x8x32xf32>
    %354 = arith.mulf %349, %353 : vector<1x8x32xf32>
    %355 = arith.addf %346, %354 : vector<1x8x32xf32>
    %356 = vector.extract_strided_slice %306 {offsets = [0, 0, 0], sizes = [1, 5, 32], strides = [1, 1, 1]} : vector<1x8x32xf32> to vector<1x5x32xf32>
    %357 = tpu.concatenate %347, %356 in 1 : vector<1x3x32xf32>, vector<1x5x32xf32> -> vector<1x8x32xf32>
    %358 = vector.extract_strided_slice %34 {offsets = [0, 0], sizes = [1, 32], strides = [1, 1]} : vector<7x32xf32> to vector<1x32xf32>
    %359 = vector.shape_cast %358 : vector<1x32xf32> to vector<32xf32>
    %360 = vector.shape_cast %359 : vector<32xf32> to vector<1x1x32xf32>
    %361 = vector.broadcast %360 : vector<1x1x32xf32> to vector<1x8x32xf32>
    %362 = arith.mulf %357, %361 : vector<1x8x32xf32>
    %363 = arith.addf %355, %362 : vector<1x8x32xf32>
    %364 = vector.shape_cast %307 : vector<1x32xf32> to vector<1x1x32xf32>
    %365 = vector.broadcast %364 : vector<1x1x32xf32> to vector<1x8x32xf32>
    %366 = arith.addf %363, %365 : vector<1x8x32xf32>
    %367 = arith.negf %366 : vector<1x8x32xf32>
    %368 = math.exp %367 : vector<1x8x32xf32>
    %cst_125 = arith.constant 1.000000e+00 : f32
    %369 = vector.broadcast %cst_125 : f32 to vector<1x8x32xf32>
    %370 = arith.addf %369, %368 : vector<1x8x32xf32>
    %371 = arith.divf %369, %370 : vector<1x8x32xf32>
    %372 = arith.mulf %366, %371 : vector<1x8x32xf32>
    %373 = arith.mulf %260, %372 : vector<1x8x32xf32>
    %374 = vector.extract_strided_slice %8 {offsets = [10, 0], sizes = [1, 32], strides = [1, 1]} : vector<19x32xf32> to vector<1x32xf32>
    %375 = vector.shape_cast %373 : vector<1x8x32xf32> to vector<8x32xf32>
    %376 = arith.truncf %375 : vector<8x32xf32> to vector<8x32xbf16>
    %cst_126 = arith.constant dense<0.000000e+00> : vector<8x32xf32>
    %377 = tpu.matmul %376, %36, %cst_126 {dimension_numbers = #tpu.dot_dimension_numbers<[1], [0], [0], [1], [0, 0, 1, 1], [], []>} : vector<8x32xbf16>, vector<32x32xbf16>, vector<8x32xf32> -> vector<8x32xf32>
    %378 = vector.broadcast %374 : vector<1x32xf32> to vector<8x32xf32>
    %379 = arith.addf %377, %378 : vector<8x32xf32>
    %380 = vector.shape_cast %379 : vector<8x32xf32> to vector<1x8x32xf32>
    %381 = vector.extract_strided_slice %8 {offsets = [11, 0], sizes = [1, 32], strides = [1, 1]} : vector<19x32xf32> to vector<1x32xf32>
    %382 = vector.extract_strided_slice %38 {offsets = [1, 0], sizes = [1, 32], strides = [1, 1]} : vector<3x32xf32> to vector<1x32xf32>
    %383 = vector.shape_cast %382 : vector<1x32xf32> to vector<32xf32>
    %384 = vector.shape_cast %383 : vector<32xf32> to vector<1x1x32xf32>
    %385 = vector.broadcast %384 : vector<1x1x32xf32> to vector<1x8x32xf32>
    %386 = arith.mulf %214, %385 : vector<1x8x32xf32>
    %cst_127 = arith.constant 0.000000e+00 : f32
    %387 = vector.broadcast %cst_127 : f32 to vector<1x1x32xf32>
    %388 = vector.extract_strided_slice %214 {offsets = [0, 1, 0], sizes = [1, 7, 32], strides = [1, 1, 1]} : vector<1x8x32xf32> to vector<1x7x32xf32>
    %389 = tpu.concatenate %388, %387 in 1 : vector<1x7x32xf32>, vector<1x1x32xf32> -> vector<1x8x32xf32>
    %390 = vector.extract_strided_slice %38 {offsets = [2, 0], sizes = [1, 32], strides = [1, 1]} : vector<3x32xf32> to vector<1x32xf32>
    %391 = vector.shape_cast %390 : vector<1x32xf32> to vector<32xf32>
    %392 = vector.shape_cast %391 : vector<32xf32> to vector<1x1x32xf32>
    %393 = vector.broadcast %392 : vector<1x1x32xf32> to vector<1x8x32xf32>
    %394 = arith.mulf %389, %393 : vector<1x8x32xf32>
    %395 = arith.addf %386, %394 : vector<1x8x32xf32>
    %396 = vector.extract_strided_slice %214 {offsets = [0, 0, 0], sizes = [1, 7, 32], strides = [1, 1, 1]} : vector<1x8x32xf32> to vector<1x7x32xf32>
    %397 = tpu.concatenate %387, %396 in 1 : vector<1x1x32xf32>, vector<1x7x32xf32> -> vector<1x8x32xf32>
    %398 = vector.extract_strided_slice %38 {offsets = [0, 0], sizes = [1, 32], strides = [1, 1]} : vector<3x32xf32> to vector<1x32xf32>
    %399 = vector.shape_cast %398 : vector<1x32xf32> to vector<32xf32>
    %400 = vector.shape_cast %399 : vector<32xf32> to vector<1x1x32xf32>
    %401 = vector.broadcast %400 : vector<1x1x32xf32> to vector<1x8x32xf32>
    %402 = arith.mulf %397, %401 : vector<1x8x32xf32>
    %403 = arith.addf %395, %402 : vector<1x8x32xf32>
    %404 = vector.shape_cast %381 : vector<1x32xf32> to vector<1x1x32xf32>
    %405 = vector.broadcast %404 : vector<1x1x32xf32> to vector<1x8x32xf32>
    %406 = arith.addf %403, %405 : vector<1x8x32xf32>
    %407 = arith.addf %214, %406 : vector<1x8x32xf32>
    %408 = vector.extract_strided_slice %8 {offsets = [12, 0], sizes = [1, 32], strides = [1, 1]} : vector<19x32xf32> to vector<1x32xf32>
    %409 = vector.extract_strided_slice %40 {offsets = [1, 0], sizes = [1, 32], strides = [1, 1]} : vector<3x32xf32> to vector<1x32xf32>
    %410 = vector.shape_cast %409 : vector<1x32xf32> to vector<32xf32>
    %411 = vector.shape_cast %410 : vector<32xf32> to vector<1x1x32xf32>
    %412 = vector.broadcast %411 : vector<1x1x32xf32> to vector<1x8x32xf32>
    %413 = arith.mulf %380, %412 : vector<1x8x32xf32>
    %cst_128 = arith.constant 0.000000e+00 : f32
    %414 = vector.broadcast %cst_128 : f32 to vector<1x1x32xf32>
    %415 = vector.extract_strided_slice %380 {offsets = [0, 1, 0], sizes = [1, 7, 32], strides = [1, 1, 1]} : vector<1x8x32xf32> to vector<1x7x32xf32>
    %416 = tpu.concatenate %415, %414 in 1 : vector<1x7x32xf32>, vector<1x1x32xf32> -> vector<1x8x32xf32>
    %417 = vector.extract_strided_slice %40 {offsets = [2, 0], sizes = [1, 32], strides = [1, 1]} : vector<3x32xf32> to vector<1x32xf32>
    %418 = vector.shape_cast %417 : vector<1x32xf32> to vector<32xf32>
    %419 = vector.shape_cast %418 : vector<32xf32> to vector<1x1x32xf32>
    %420 = vector.broadcast %419 : vector<1x1x32xf32> to vector<1x8x32xf32>
    %421 = arith.mulf %416, %420 : vector<1x8x32xf32>
    %422 = arith.addf %413, %421 : vector<1x8x32xf32>
    %423 = vector.extract_strided_slice %380 {offsets = [0, 0, 0], sizes = [1, 7, 32], strides = [1, 1, 1]} : vector<1x8x32xf32> to vector<1x7x32xf32>
    %424 = tpu.concatenate %414, %423 in 1 : vector<1x1x32xf32>, vector<1x7x32xf32> -> vector<1x8x32xf32>
    %425 = vector.extract_strided_slice %40 {offsets = [0, 0], sizes = [1, 32], strides = [1, 1]} : vector<3x32xf32> to vector<1x32xf32>
    %426 = vector.shape_cast %425 : vector<1x32xf32> to vector<32xf32>
    %427 = vector.shape_cast %426 : vector<32xf32> to vector<1x1x32xf32>
    %428 = vector.broadcast %427 : vector<1x1x32xf32> to vector<1x8x32xf32>
    %429 = arith.mulf %424, %428 : vector<1x8x32xf32>
    %430 = arith.addf %422, %429 : vector<1x8x32xf32>
    %431 = vector.shape_cast %408 : vector<1x32xf32> to vector<1x1x32xf32>
    %432 = vector.broadcast %431 : vector<1x1x32xf32> to vector<1x8x32xf32>
    %433 = arith.addf %430, %432 : vector<1x8x32xf32>
    %434 = arith.addf %380, %433 : vector<1x8x32xf32>
    %435 = vector.shape_cast %407 : vector<1x8x32xf32> to vector<8x32xf32>
    %436 = arith.truncf %435 : vector<8x32xf32> to vector<8x32xbf16>
    %cst_129 = arith.constant dense<0.000000e+00> : vector<8x32xf32>
    %437 = tpu.matmul %436, %42, %cst_129 {dimension_numbers = #tpu.dot_dimension_numbers<[1], [0], [0], [1], [0, 0, 1, 1], [], []>} : vector<8x32xbf16>, vector<32x32xbf16>, vector<8x32xf32> -> vector<8x32xf32>
    %438 = vector.shape_cast %434 : vector<1x8x32xf32> to vector<8x32xf32>
    %439 = arith.truncf %438 : vector<8x32xf32> to vector<8x32xbf16>
    %cst_130 = arith.constant dense<0.000000e+00> : vector<8x32xf32>
    %440 = tpu.matmul %439, %44, %cst_130 {dimension_numbers = #tpu.dot_dimension_numbers<[1], [0], [0], [1], [0, 0, 1, 1], [], []>} : vector<8x32xbf16>, vector<32x32xbf16>, vector<8x32xf32> -> vector<8x32xf32>
    %441 = arith.addf %437, %440 : vector<8x32xf32>
    %442 = vector.extract_strided_slice %8 {offsets = [13, 0], sizes = [1, 32], strides = [1, 1]} : vector<19x32xf32> to vector<1x32xf32>
    %443 = vector.broadcast %442 : vector<1x32xf32> to vector<8x32xf32>
    %444 = arith.addf %441, %443 : vector<8x32xf32>
    %445 = vector.shape_cast %444 : vector<8x32xf32> to vector<1x8x32xf32>
    %446 = arith.addf %98, %445 : vector<1x8x32xf32>
    %447 = vector.extract_strided_slice %8 {offsets = [14, 0], sizes = [1, 32], strides = [1, 1]} : vector<19x32xf32> to vector<1x32xf32>
    %448 = vector.extract_strided_slice %8 {offsets = [15, 0], sizes = [1, 32], strides = [1, 1]} : vector<19x32xf32> to vector<1x32xf32>
    %cst_131 = arith.constant dense<0.000000e+00> : vector<1x8xf32>
    %449 = vector.multi_reduction <add>, %446, %cst_131 [2] : vector<1x8x32xf32> to vector<1x8xf32>
    %450 = vector.shape_cast %449 : vector<1x8xf32> to vector<1x8x1xf32>
    %cst_132 = arith.constant 3.200000e+01 : f32
    %451 = vector.broadcast %cst_132 : f32 to vector<1x8x1xf32>
    %452 = arith.divf %450, %451 : vector<1x8x1xf32>
    %453 = vector.broadcast %452 : vector<1x8x1xf32> to vector<1x8x32xf32>
    %454 = arith.subf %446, %453 : vector<1x8x32xf32>
    %455 = arith.mulf %454, %454 : vector<1x8x32xf32>
    %cst_133 = arith.constant dense<0.000000e+00> : vector<1x8xf32>
    %456 = vector.multi_reduction <add>, %455, %cst_133 [2] : vector<1x8x32xf32> to vector<1x8xf32>
    %457 = vector.shape_cast %456 : vector<1x8xf32> to vector<1x8x1xf32>
    %cst_134 = arith.constant 3.200000e+01 : f32
    %458 = vector.broadcast %cst_134 : f32 to vector<1x8x1xf32>
    %459 = arith.divf %457, %458 : vector<1x8x1xf32>
    %460 = vector.broadcast %452 : vector<1x8x1xf32> to vector<1x8x32xf32>
    %461 = arith.subf %446, %460 : vector<1x8x32xf32>
    %cst_135 = arith.constant 9.99999974E-6 : f32
    %462 = vector.broadcast %cst_135 : f32 to vector<1x8x1xf32>
    %463 = arith.addf %459, %462 : vector<1x8x1xf32>
    %464 = math.rsqrt %463 : vector<1x8x1xf32>
    %465 = vector.broadcast %464 : vector<1x8x1xf32> to vector<1x8x32xf32>
    %466 = arith.mulf %461, %465 : vector<1x8x32xf32>
    %467 = vector.shape_cast %447 : vector<1x32xf32> to vector<1x1x32xf32>
    %468 = vector.broadcast %467 : vector<1x1x32xf32> to vector<1x8x32xf32>
    %469 = arith.mulf %466, %468 : vector<1x8x32xf32>
    %470 = vector.shape_cast %448 : vector<1x32xf32> to vector<1x1x32xf32>
    %471 = vector.broadcast %470 : vector<1x1x32xf32> to vector<1x8x32xf32>
    %472 = arith.addf %469, %471 : vector<1x8x32xf32>
    %473 = vector.extract_strided_slice %10 {offsets = [1, 0], sizes = [1, 64], strides = [1, 1]} : vector<2x64xf32> to vector<1x64xf32>
    %474 = vector.extract_strided_slice %8 {offsets = [16, 0], sizes = [1, 32], strides = [1, 1]} : vector<19x32xf32> to vector<1x32xf32>
    %475 = vector.shape_cast %472 : vector<1x8x32xf32> to vector<8x32xf32>
    %476 = arith.truncf %475 : vector<8x32xf32> to vector<8x32xbf16>
    %cst_136 = arith.constant dense<0.000000e+00> : vector<8x64xf32>
    %477 = tpu.matmul %476, %46, %cst_136 {dimension_numbers = #tpu.dot_dimension_numbers<[1], [0], [0], [1], [0, 0, 1, 1], [], []>} : vector<8x32xbf16>, vector<32x64xbf16>, vector<8x64xf32> -> vector<8x64xf32>
    %478 = vector.broadcast %473 : vector<1x64xf32> to vector<8x64xf32>
    %479 = arith.addf %477, %478 : vector<8x64xf32>
    %480 = vector.shape_cast %479 : vector<8x64xf32> to vector<1x8x64xf32>
    %481 = arith.negf %480 : vector<1x8x64xf32>
    %482 = math.exp %481 : vector<1x8x64xf32>
    %cst_137 = arith.constant 1.000000e+00 : f32
    %483 = vector.broadcast %cst_137 : f32 to vector<1x8x64xf32>
    %484 = arith.addf %483, %482 : vector<1x8x64xf32>
    %485 = arith.divf %483, %484 : vector<1x8x64xf32>
    %486 = arith.mulf %480, %485 : vector<1x8x64xf32>
    %487 = vector.shape_cast %486 : vector<1x8x64xf32> to vector<8x64xf32>
    %488 = arith.truncf %487 : vector<8x64xf32> to vector<8x64xbf16>
    %cst_138 = arith.constant dense<0.000000e+00> : vector<8x32xf32>
    %489 = tpu.matmul %488, %48, %cst_138 {dimension_numbers = #tpu.dot_dimension_numbers<[1], [0], [0], [1], [0, 0, 1, 1], [], []>} : vector<8x64xbf16>, vector<64x32xbf16>, vector<8x32xf32> -> vector<8x32xf32>
    %490 = vector.broadcast %474 : vector<1x32xf32> to vector<8x32xf32>
    %491 = arith.addf %489, %490 : vector<8x32xf32>
    %492 = vector.shape_cast %491 : vector<8x32xf32> to vector<1x8x32xf32>
    %cst_139 = arith.constant 5.000000e-01 : f32
    %493 = vector.broadcast %cst_139 : f32 to vector<1x8x32xf32>
    %494 = arith.mulf %493, %492 : vector<1x8x32xf32>
    %495 = arith.addf %446, %494 : vector<1x8x32xf32>
    %496 = vector.extract_strided_slice %8 {offsets = [17, 0], sizes = [1, 32], strides = [1, 1]} : vector<19x32xf32> to vector<1x32xf32>
    %497 = vector.extract_strided_slice %8 {offsets = [18, 0], sizes = [1, 32], strides = [1, 1]} : vector<19x32xf32> to vector<1x32xf32>
    %cst_140 = arith.constant dense<0.000000e+00> : vector<1x8xf32>
    %498 = vector.multi_reduction <add>, %495, %cst_140 [2] : vector<1x8x32xf32> to vector<1x8xf32>
    %499 = vector.shape_cast %498 : vector<1x8xf32> to vector<1x8x1xf32>
    %cst_141 = arith.constant 3.200000e+01 : f32
    %500 = vector.broadcast %cst_141 : f32 to vector<1x8x1xf32>
    %501 = arith.divf %499, %500 : vector<1x8x1xf32>
    %502 = vector.broadcast %501 : vector<1x8x1xf32> to vector<1x8x32xf32>
    %503 = arith.subf %495, %502 : vector<1x8x32xf32>
    %504 = arith.mulf %503, %503 : vector<1x8x32xf32>
    %cst_142 = arith.constant dense<0.000000e+00> : vector<1x8xf32>
    %505 = vector.multi_reduction <add>, %504, %cst_142 [2] : vector<1x8x32xf32> to vector<1x8xf32>
    %506 = vector.shape_cast %505 : vector<1x8xf32> to vector<1x8x1xf32>
    %cst_143 = arith.constant 3.200000e+01 : f32
    %507 = vector.broadcast %cst_143 : f32 to vector<1x8x1xf32>
    %508 = arith.divf %506, %507 : vector<1x8x1xf32>
    %509 = vector.broadcast %501 : vector<1x8x1xf32> to vector<1x8x32xf32>
    %510 = arith.subf %495, %509 : vector<1x8x32xf32>
    %cst_144 = arith.constant 9.99999974E-6 : f32
    %511 = vector.broadcast %cst_144 : f32 to vector<1x8x1xf32>
    %512 = arith.addf %508, %511 : vector<1x8x1xf32>
    %513 = math.rsqrt %512 : vector<1x8x1xf32>
    %514 = vector.broadcast %513 : vector<1x8x1xf32> to vector<1x8x32xf32>
    %515 = arith.mulf %510, %514 : vector<1x8x32xf32>
    %516 = vector.shape_cast %496 : vector<1x32xf32> to vector<1x1x32xf32>
    %517 = vector.broadcast %516 : vector<1x1x32xf32> to vector<1x8x32xf32>
    %518 = arith.mulf %515, %517 : vector<1x8x32xf32>
    %519 = vector.shape_cast %497 : vector<1x32xf32> to vector<1x1x32xf32>
    %520 = vector.broadcast %519 : vector<1x1x32xf32> to vector<1x8x32xf32>
    %521 = arith.addf %518, %520 : vector<1x8x32xf32>
    %c0_145 = arith.constant 0 : index
    %c0_146 = arith.constant 0 : index
    %c0_147 = arith.constant 0 : index
    %522 = vector.load %arg28[%c0_145, %c0_146, %c0_147] : memref<1x8x32xf32, #tpu.memory_space<vmem>>, vector<1x8x32xf32>
    tpu.vector_store %arg28[%c0_145, %c0_146, %c0_147], %521 {strides = array<i32>} : memref<1x8x32xf32, #tpu.memory_space<vmem>>, vector<1x8x32xf32>,
    %c1_i32 = arith.constant 1 : i32
    %523 = arith.cmpi eq, %arg1, %c1_i32 : i32
    %524 = arith.extui %523 : i1 to i32
    %c0_i32_148 = arith.constant 0 : i32
    %525 = arith.cmpi ne, %524, %c0_i32_148 : i32
    scf.if %525 {
      %c0_149 = arith.constant 0 : index
      %c0_150 = arith.constant 0 : index
      %526 = vector.load %arg26[%c0_149, %c0_150] : memref<1x32xf32, #tpu.memory_space<vmem>>, vector<1x32xf32>
      %c0_151 = arith.constant 0 : index
      %c0_152 = arith.constant 0 : index
      %527 = vector.load %arg27[%c0_151, %c0_152] : memref<1x32xf32, #tpu.memory_space<vmem>>, vector<1x32xf32>
      %cst_153 = arith.constant dense<0.000000e+00> : vector<1x8xf32>
      %528 = vector.multi_reduction <add>, %521, %cst_153 [2] : vector<1x8x32xf32> to vector<1x8xf32>
      %529 = vector.shape_cast %528 : vector<1x8xf32> to vector<1x8x1xf32>
      %cst_154 = arith.constant 3.200000e+01 : f32
      %530 = vector.broadcast %cst_154 : f32 to vector<1x8x1xf32>
      %531 = arith.divf %529, %530 : vector<1x8x1xf32>
      %532 = vector.broadcast %531 : vector<1x8x1xf32> to vector<1x8x32xf32>
      %533 = arith.subf %521, %532 : vector<1x8x32xf32>
      %534 = arith.mulf %533, %533 : vector<1x8x32xf32>
      %cst_155 = arith.constant dense<0.000000e+00> : vector<1x8xf32>
      %535 = vector.multi_reduction <add>, %534, %cst_155 [2] : vector<1x8x32xf32> to vector<1x8xf32>
      %536 = vector.shape_cast %535 : vector<1x8xf32> to vector<1x8x1xf32>
      %cst_156 = arith.constant 3.200000e+01 : f32
      %537 = vector.broadcast %cst_156 : f32 to vector<1x8x1xf32>
      %538 = arith.divf %536, %537 : vector<1x8x1xf32>
      %539 = vector.broadcast %531 : vector<1x8x1xf32> to vector<1x8x32xf32>
      %540 = arith.subf %521, %539 : vector<1x8x32xf32>
      %cst_157 = arith.constant 9.99999974E-6 : f32
      %541 = vector.broadcast %cst_157 : f32 to vector<1x8x1xf32>
      %542 = arith.addf %538, %541 : vector<1x8x1xf32>
      %543 = math.rsqrt %542 : vector<1x8x1xf32>
      %544 = vector.broadcast %543 : vector<1x8x1xf32> to vector<1x8x32xf32>
      %545 = arith.mulf %540, %544 : vector<1x8x32xf32>
      %546 = vector.shape_cast %526 : vector<1x32xf32> to vector<1x1x32xf32>
      %547 = vector.broadcast %546 : vector<1x1x32xf32> to vector<1x8x32xf32>
      %548 = arith.mulf %545, %547 : vector<1x8x32xf32>
      %549 = vector.shape_cast %527 : vector<1x32xf32> to vector<1x1x32xf32>
      %550 = vector.broadcast %549 : vector<1x1x32xf32> to vector<1x8x32xf32>
      %551 = arith.addf %548, %550 : vector<1x8x32xf32>
      %552 = vector.broadcast %4 : vector<1x8x1xf32> to vector<1x8x32xf32>
      %553 = arith.mulf %551, %552 : vector<1x8x32xf32>
      %c0_158 = arith.constant 0 : index
      %c0_159 = arith.constant 0 : index
      %c0_160 = arith.constant 0 : index
      %554 = vector.load %arg28[%c0_158, %c0_159, %c0_160] : memref<1x8x32xf32, #tpu.memory_space<vmem>>, vector<1x8x32xf32>
      tpu.vector_store %arg28[%c0_158, %c0_159, %c0_160], %553 {strides = array<i32>} : memref<1x8x32xf32, #tpu.memory_space<vmem>>, vector<1x8x32xf32>,
    } else {
    }
    return
  }
  func.func @transform_0(%arg0: i32, %arg1: i32) -> (i32, i32, i32) {
    %c0_i32 = arith.constant 0 : i32
    %c0_i32_0 = arith.constant 0 : i32
    %c0_i32_1 = arith.constant 0 : i32
    return %arg0, %c0_i32, %c0_i32_0 : i32, i32, i32
  }
  func.func @transform_1(%arg0: i32, %arg1: i32) -> (i32, i32, i32) {
    %c0_i32 = arith.constant 0 : i32
    %c0_i32_0 = arith.constant 0 : i32
    %c0_i32_1 = arith.constant 0 : i32
    return %arg0, %c0_i32, %c0_i32_0 : i32, i32, i32
  }
  func.func @transform_2(%arg0: i32, %arg1: i32) -> (i32, i32) {
    %c0_i32 = arith.constant 0 : i32
    %c0_i32_0 = arith.constant 0 : i32
    %c0_i32_1 = arith.constant 0 : i32
    return %c0_i32, %c0_i32_0 : i32, i32
  }
  func.func @transform_3(%arg0: i32, %arg1: i32) -> (i32, i32, i32) {
    %c0_i32 = arith.constant 0 : i32
    %c0_i32_0 = arith.constant 0 : i32
    %c0_i32_1 = arith.constant 0 : i32
    return %arg1, %c0_i32, %c0_i32_0 : i32, i32, i32
  }
  func.func @transform_4(%arg0: i32, %arg1: i32) -> (i32, i32, i32) {
    %c0_i32 = arith.constant 0 : i32
    %c0_i32_0 = arith.constant 0 : i32
    %c0_i32_1 = arith.constant 0 : i32
    return %arg1, %c0_i32, %c0_i32_0 : i32, i32, i32
  }
  func.func @transform_5(%arg0: i32, %arg1: i32) -> (i32, i32, i32) {
    %c0_i32 = arith.constant 0 : i32
    %c0_i32_0 = arith.constant 0 : i32
    %c0_i32_1 = arith.constant 0 : i32
    return %arg1, %c0_i32, %c0_i32_0 : i32, i32, i32
  }
  func.func @transform_6(%arg0: i32, %arg1: i32) -> (i32, i32, i32) {
    %c0_i32 = arith.constant 0 : i32
    %c0_i32_0 = arith.constant 0 : i32
    %c0_i32_1 = arith.constant 0 : i32
    return %arg1, %c0_i32, %c0_i32_0 : i32, i32, i32
  }
  func.func @transform_7(%arg0: i32, %arg1: i32) -> (i32, i32, i32) {
    %c0_i32 = arith.constant 0 : i32
    %c0_i32_0 = arith.constant 0 : i32
    %c0_i32_1 = arith.constant 0 : i32
    return %arg1, %c0_i32, %c0_i32_0 : i32, i32, i32
  }
  func.func @transform_8(%arg0: i32, %arg1: i32) -> (i32, i32, i32) {
    %c0_i32 = arith.constant 0 : i32
    %c0_i32_0 = arith.constant 0 : i32
    %c0_i32_1 = arith.constant 0 : i32
    return %arg1, %c0_i32, %c0_i32_0 : i32, i32, i32
  }
  func.func @transform_9(%arg0: i32, %arg1: i32) -> (i32, i32, i32) {
    %c0_i32 = arith.constant 0 : i32
    %c0_i32_0 = arith.constant 0 : i32
    %c0_i32_1 = arith.constant 0 : i32
    return %arg1, %c0_i32, %c0_i32_0 : i32, i32, i32
  }
  func.func @transform_10(%arg0: i32, %arg1: i32) -> (i32, i32, i32) {
    %c0_i32 = arith.constant 0 : i32
    %c0_i32_0 = arith.constant 0 : i32
    %c0_i32_1 = arith.constant 0 : i32
    return %arg1, %c0_i32, %c0_i32_0 : i32, i32, i32
  }
  func.func @transform_11(%arg0: i32, %arg1: i32) -> (i32, i32, i32) {
    %c0_i32 = arith.constant 0 : i32
    %c0_i32_0 = arith.constant 0 : i32
    %c0_i32_1 = arith.constant 0 : i32
    return %arg1, %c0_i32, %c0_i32_0 : i32, i32, i32
  }
  func.func @transform_12(%arg0: i32, %arg1: i32) -> (i32, i32, i32) {
    %c0_i32 = arith.constant 0 : i32
    %c0_i32_0 = arith.constant 0 : i32
    %c0_i32_1 = arith.constant 0 : i32
    return %arg1, %c0_i32, %c0_i32_0 : i32, i32, i32
  }
  func.func @transform_13(%arg0: i32, %arg1: i32) -> (i32, i32, i32) {
    %c0_i32 = arith.constant 0 : i32
    %c0_i32_0 = arith.constant 0 : i32
    %c0_i32_1 = arith.constant 0 : i32
    return %arg1, %c0_i32, %c0_i32_0 : i32, i32, i32
  }
  func.func @transform_14(%arg0: i32, %arg1: i32) -> (i32, i32, i32) {
    %c0_i32 = arith.constant 0 : i32
    %c0_i32_0 = arith.constant 0 : i32
    %c0_i32_1 = arith.constant 0 : i32
    return %arg1, %c0_i32, %c0_i32_0 : i32, i32, i32
  }
  func.func @transform_15(%arg0: i32, %arg1: i32) -> (i32, i32, i32) {
    %c0_i32 = arith.constant 0 : i32
    %c0_i32_0 = arith.constant 0 : i32
    %c0_i32_1 = arith.constant 0 : i32
    return %arg1, %c0_i32, %c0_i32_0 : i32, i32, i32
  }
  func.func @transform_16(%arg0: i32, %arg1: i32) -> (i32, i32, i32) {
    %c0_i32 = arith.constant 0 : i32
    %c0_i32_0 = arith.constant 0 : i32
    %c0_i32_1 = arith.constant 0 : i32
    return %arg1, %c0_i32, %c0_i32_0 : i32, i32, i32
  }
  func.func @transform_17(%arg0: i32, %arg1: i32) -> (i32, i32, i32) {
    %c0_i32 = arith.constant 0 : i32
    %c0_i32_0 = arith.constant 0 : i32
    %c0_i32_1 = arith.constant 0 : i32
    return %arg1, %c0_i32, %c0_i32_0 : i32, i32, i32
  }
  func.func @transform_18(%arg0: i32, %arg1: i32) -> (i32, i32, i32) {
    %c0_i32 = arith.constant 0 : i32
    %c0_i32_0 = arith.constant 0 : i32
    %c0_i32_1 = arith.constant 0 : i32
    return %arg1, %c0_i32, %c0_i32_0 : i32, i32, i32
  }
  func.func @transform_19(%arg0: i32, %arg1: i32) -> (i32, i32, i32) {
    %c0_i32 = arith.constant 0 : i32
    %c0_i32_0 = arith.constant 0 : i32
    %c0_i32_1 = arith.constant 0 : i32
    return %arg1, %c0_i32, %c0_i32_0 : i32, i32, i32
  }
  func.func @transform_20(%arg0: i32, %arg1: i32) -> (i32, i32, i32) {
    %c0_i32 = arith.constant 0 : i32
    %c0_i32_0 = arith.constant 0 : i32
    %c0_i32_1 = arith.constant 0 : i32
    return %arg1, %c0_i32, %c0_i32_0 : i32, i32, i32
  }
  func.func @transform_21(%arg0: i32, %arg1: i32) -> (i32, i32, i32) {
    %c0_i32 = arith.constant 0 : i32
    %c0_i32_0 = arith.constant 0 : i32
    %c0_i32_1 = arith.constant 0 : i32
    return %arg1, %c0_i32, %c0_i32_0 : i32, i32, i32
  }
  func.func @transform_22(%arg0: i32, %arg1: i32) -> (i32, i32, i32) {
    %c0_i32 = arith.constant 0 : i32
    %c0_i32_0 = arith.constant 0 : i32
    %c0_i32_1 = arith.constant 0 : i32
    return %arg1, %c0_i32, %c0_i32_0 : i32, i32, i32
  }
  func.func @transform_23(%arg0: i32, %arg1: i32) -> (i32, i32, i32) {
    %c0_i32 = arith.constant 0 : i32
    %c0_i32_0 = arith.constant 0 : i32
    %c0_i32_1 = arith.constant 0 : i32
    return %arg1, %c0_i32, %c0_i32_0 : i32, i32, i32
  }
  func.func @transform_24(%arg0: i32, %arg1: i32) -> (i32, i32) {
    %c0_i32 = arith.constant 0 : i32
    %c0_i32_0 = arith.constant 0 : i32
    %c0_i32_1 = arith.constant 0 : i32
    return %c0_i32, %c0_i32_0 : i32, i32
  }
  func.func @transform_25(%arg0: i32, %arg1: i32) -> (i32, i32) {
    %c0_i32 = arith.constant 0 : i32
    %c0_i32_0 = arith.constant 0 : i32
    %c0_i32_1 = arith.constant 0 : i32
    return %c0_i32, %c0_i32_0 : i32, i32
  }
  func.func @transform_26(%arg0: i32, %arg1: i32) -> (i32, i32, i32) {
    %c0_i32 = arith.constant 0 : i32
    %c0_i32_0 = arith.constant 0 : i32
    %c0_i32_1 = arith.constant 0 : i32
    return %arg0, %c0_i32, %c0_i32_0 : i32, i32, i32
  }
}

</mosaic_0001>

<bundles_post_ra>
// kernel: tpu_custom_call.1
= control target key start
LH: loop header
LB: loop body
LE: loop exit
PB: predicated region body
PF: predicated region fallthrough
CT: control target
= control target key end

     0   :  { %s3901_s0 = inlined_call_operand.vmem [shape: f32[2,8,32], index: 0, kind: input, shape index: {}]   ;;  %s3902_s1 = inlined_call_operand.vmem [shape: f32[2,8,1], index: 1, kind: input, shape index: {}]   ;;  %s3903_s2 = inlined_call_operand.vmem [shape: f32[4,32], index: 2, kind: input, shape index: {}]   ;;  %s3904_s3 = inlined_call_operand.vmem [shape: f32[2,19,32], index: 3, kind: input, shape index: {}]   ;;  %s3905_s4 = inlined_call_operand.vmem [shape: f32[2,2,64], index: 4, kind: input, shape index: {}]   ;;  %s3906_s5 = inlined_call_operand.vmem [shape: f32[2,2,4], index: 5, kind: input, shape index: {}]   ;;  %s3907_s6 = inlined_call_operand.vmem [shape: f32[2,5,32], index: 6, kind: input, shape index: {}]   ;;  %s3908_s7 = inlined_call_operand.vmem [shape: bf16[2,32,64], index: 7, kind: input, shape index: {}]   ;;  %s3909_s8 = inlined_call_operand.vmem [shape: bf16[2,64,32], index: 8, kind: input, shape index: {}]   ;;  %s3910_s9 = inlined_call_operand.vmem [shape: bf16[2,32,32], index: 9, kind: input, shape index: {}]   ;;  %s3911_s10 = inlined_call_operand.vmem [shape: bf16[2,32,4], index: 10, kind: input, shape index: {}]   ;;  %s3912_s11 = inlined_call_operand.vmem [shape: bf16[2,32,32], index: 11, kind: input, shape index: {}]   ;;  %s3913_s12 = inlined_call_operand.vmem [shape: bf16[2,32,4], index: 12, kind: input, shape index: {}]   ;;  %s3914_s13 = inlined_call_operand.vmem [shape: bf16[2,32,32], index: 13, kind: input, shape index: {}]   ;;  %s3915_s14 = inlined_call_operand.vmem [shape: bf16[2,32,32], index: 14, kind: input, shape index: {}]   ;;  %s3916_s15 = inlined_call_operand.vmem [shape: bf16[2,32,32], index: 15, kind: input, shape index: {}]   ;;  %s3917_s16 = inlined_call_operand.vmem [shape: f32[2,7,32], index: 16, kind: input, shape index: {}]   ;;  %s3918_s17 = inlined_call_operand.vmem [shape: bf16[2,32,32], index: 17, kind: input, shape index: {}]   ;;  %s3919_s18 = inlined_call_operand.vmem [shape: f32[2,3,32], index: 18, kind: input, shape index: {}]   ;;  %s3920_s19 = inlined_call_operand.vmem [shape: f32[2,3,32], index: 19, kind: input, shape index: {}]   ;;  %s3921_s20 = inlined_call_operand.vmem [shape: bf16[2,32,32], index: 20, kind: input, shape index: {}]   ;;  %s3922_s21 = inlined_call_operand.hbm [shape: bf16[2,32,32], index: 21, kind: input, shape index: {}]   ;;  %s3923_s22 = inlined_call_operand.hbm [shape: bf16[2,32,64], index: 22, kind: input, shape index: {}]   ;;  %s3924_s23 = inlined_call_operand.vmem [shape: bf16[2,64,32], index: 23, kind: input, shape index: {}]   ;;  %s3925_s24 = inlined_call_operand.vmem [shape: f32[1,32], index: 24, kind: input, shape index: {}]   ;;  %s3926_s25 = inlined_call_operand.vmem [shape: f32[1,32], index: 25, kind: input, shape index: {}]   ;;  %s3927_s26 = inlined_call_operand.hbm [shape: f32[2,8,32], index: 26, kind: output, shape index: {}]  }
   0x1   :  { %3951 = sst [smem:[#allocation36_spill]] %s3901_s0 }
   0x2   :  { %3952 = sst [smem:[#allocation37_spill]] %s3902_s1 }
   0x3   :  { %3953 = sst [smem:[#allocation38_spill]] %s3903_s2 }
   0x4   :  { %3954 = sst [smem:[#allocation39_spill]] %s3904_s3 }
   0x5   :  { %3955 = sst [smem:[#allocation40_spill]] %s3905_s4 }
   0x6   :  { %3956 = sst [smem:[#allocation41_spill]] %s3906_s5 }
   0x7   :  { %3957 = sst [smem:[#allocation42_spill]] %s3907_s6 }
   0x8   :  { %3958 = sst [smem:[#allocation43_spill]] %s3908_s7 }
   0x9   :  { %3959 = sst [smem:[#allocation44_spill]] %s3909_s8 }
   0xa   :  { %3960 = sst [smem:[#allocation45_spill]] %s3910_s9 }
   0xb   :  { %3961 = sst [smem:[#allocation46_spill]] %s3911_s10 }
   0xc   :  { %3962 = sst [smem:[#allocation47_spill]] %s3912_s11 }
   0xd   :  { %3963 = sst [smem:[#allocation48_spill]] %s3913_s12 }
   0xe   :  { %3964 = sst [smem:[#allocation49_spill]] %s3914_s13 }
   0xf   :  { %3965 = sst [smem:[#allocation50_spill]] %s3915_s14 }
  0x10   :  { %3966 = sst [smem:[#allocation51_spill]] %s3916_s15 }
  0x11   :  { %3967 = sst [smem:[#allocation52_spill]] %s3917_s16 }
  0x12   :  { %3968 = sst [smem:[#allocation53_spill]] %s3918_s17 }
  0x13   :  { %3969 = sst [smem:[#allocation54_spill]] %s3919_s18 }
  0x14   :  { %3970 = sst [smem:[#allocation55_spill]] %s3920_s19 }
  0x15   :  { %3971 = sst [smem:[#allocation56_spill]] %s3921_s20 }
  0x16   :  { %3972 = sst [smem:[#allocation57_spill]] %s3922_s21 }
  0x17   :  { %3973 = sst [smem:[#allocation58_spill]] %s3923_s22 }
  0x18   :  { %3974 = sst [smem:[#allocation59_spill]] %s3924_s23 }
  0x19   :  { %3975 = sst [smem:[#allocation60_spill]] %s3925_s24 }
  0x1a   :  { %3976 = sst [smem:[#allocation61_spill]] %s3926_s25 }
  0x1b   :  { %3977 = sst [smem:[#allocation62_spill]] %s3927_s26 }
  0x1c   :  { %31 = vsyncpa [#allocation3], 0 }
  0x1d   :  { %33 = vsyncpa [#allocation3 + $0x1], 0 }
  0x1e   :  { %34 = vsyncpa [#allocation6], 0 }
  0x1f   :  { %36 = vsyncpa [#allocation6 + $0x1], 0 }
  0x20   :  { %37 = vsyncpa [#allocation4], 0 }
  0x21   :  { %39 = vsyncpa [#allocation4 + $0x1], 0  ;;  %s3381_s27 = smov 0   ;;  %s3383_s3 = smov 0  }
  0x22   :  { %s3385_s7 = smov 0   ;;  %s3387_s28 = smov 0  }
  0x23   :  { %s3389_s8 = smov 0   ;;  %s3391_s4 = smov 0  }
  0x24   :  { %s3393_s29 = smov 0   ;;  %s3395_s0 = smov 0  }
  0x25   :  { %s3397_s9 = smov 0   ;;  %s3399_s30 = smov 0  }
  0x26   :  { %s3401_s2 = smov 0  }
  0x27 LB: > { %3978 = sst [smem:[#allocation11_spill]] %s3199_s27  ;;  %s2650_s5 = sadd.s32 4294967295, %s3239_s2   ;;  %s3239_s2 = sphi %s3401_s2, %s45_s2   ;;  %s3235_s30 = sphi %s3399_s30, %s4062_s30   ;;  %s3231_s9 = sphi %s3397_s9, %s4061_s9   ;;  %s3227_s0 = sphi %s3395_s0, %s4060_s0   ;;  %s3223_s29 = sphi %s3393_s29, %s4059_s29   ;;  %s3219_s4 = sphi %s3391_s4, %s4058_s4   ;;  %s3215_s8 = sphi %s3389_s8, %s4057_s8   ;;  %s3211_s28 = sphi %s3387_s28, %s4056_s28   ;;  %s3207_s7 = sphi %s3385_s7, %s4055_s7   ;;  %s3203_s3 = sphi %s3383_s3, %s4054_s3   ;;  %s3199_s27 = sphi %s3381_s27, %s4053_s27  }
  0x28   : > { %3979 = sst [smem:[#allocation12_spill]] %s3203_s3  ;;  %s2651_s10 = sadd.s32 4294967294, %s3239_s2  }
  0x29   : > { %3980 = sst [smem:[#allocation13_spill]] %s3207_s7  ;;  %s54_s6 = sadd.s32 1, %s3231_s9 }
  0x2a   : > { %3981 = sst [smem:[#allocation14_spill]] %s3215_s8  ;;  %s57_s1 = sadd.s32 1, %s3235_s30 }
  0x2b   : > { %3982 = sst [smem:[#allocation15_spill]] %s3219_s4  ;;  %p55_p0 = scmp.ge.s32.totalorder %s54_s6, 2 }
  0x2c   : > { %3983 = sst [smem:[#allocation16_spill]] %s3227_s0  ;;  %s605_s26 = sadd.s32 1, %s3219_s4 }
  0x2d   : > { %3984 = sst [smem:[#allocation17_spill]] %s3231_s9  ;;  %p612_p1 = scmp.ne.s32.totalorder %s3219_s4, %s3215_s8 }
  0x2e   : > { %3985 = sst [smem:[#allocation18_spill]] %s3235_s30  ;;  %p613_p2 = scmp.eq.s32.totalorder %s3239_s2, 0 }
  0x2f   : > { %3986 = sst [smem:[#allocation19_spill]] %s3239_s2  ;;  %s4064_s6 = smov (%p55_p0, %s54_s6), 0 }
  0x30   : > { %3987 = sst [smem:[#allocation20_spill]] %s4064_s6  ;;  %s4066_s1 = smov (!%p55_p0, %s57_s1), %s3235_s30 }
  0x31   : > { %s602_s25 = ssub.s32 %s3231_s9, %s4064_s6  ;;  %p3447_p3 = por %p613_p2, %p612_p1 }
  0x32   : > { %p59_p4 = scmp.ge.s32.totalorder %s4066_s1, 2  ;;  %p603_p5 = scmp.eq.s32.totalorder %s602_s25, 0 }
  0x33   : > { %p618_p6 = scmp.ne.s32.totalorder %s3215_s8, %s3211_s28  ;;  %p619_p7 = scmp.eq.s32.totalorder %s2650_s5, 0 }
  0x34   : > { %s4068_s1 = smov (%p59_p4, %s4066_s1), 0  ;;  %s725_s18 = sadd.s32 1, %s3207_s7 }
  0x35   : > { %3989 = sst [smem:[#allocation21_spill]] %s4068_s1  ;;  %p3457_p8 = por %p619_p7, %p618_p6 }
  0x36   : > { %s3455_s23 = scalar_select %p603_p5, %s3219_s4, %s605_s26  }
  0x37   : > { %s722_s19 = ssub.s32 %s3235_s30, %s4068_s1  ;;  %p735_p10 = scmp.ne.s32.totalorder %s3207_s7, %s3203_s3 }
  0x38   : > { %3990 = sst [smem:[#allocation22_spill]] %s3455_s23  ;;  %p723_p9 = scmp.eq.s32.totalorder %s722_s19, 0 }
  0x39   : > { %p736_p11 = scmp.eq.s32.totalorder %s2650_s5, 3  ;;  %p741_p13 = scmp.ne.s32.totalorder %s3203_s3, %s3199_s27 }
  0x3a   : > { %s3467_s25 = scalar_select %p723_p9, %s3207_s7, %s725_s18  }
  0x3b   : > { %p3469_p12 = por %p736_p11, %p735_p10  ;;  %p742_p0 = scmp.eq.s32.totalorder %s2651_s10, 3 }
  0x3c   : > { %3992 = sst [smem:[#allocation23_spill]] %s3467_s25  ;;  %p2914_p1 = scmp.lt.s32.totalorder %s3239_s2, 4 }
  0x3d   : > { %s3993_s28 = scalar_select %p3469_p12, 1, 0 }
  0x3e   : > { %s3477_s26 = sand.u32 1, %s3219_s4   ;;  %p3479_p2 = por %p742_p0, %p741_p13 }
  0x3f   : > { %3994 = sst [smem:[#allocation24_spill]] %s3993_s28  ;;  %s2654_s5 = sshll.u32 %s3477_s26, 4 }
  0x40   : > { %s3995_s19 = scalar_select %p3479_p2, 1, 0 }
  0x41   : > { %s2850_s18 = sshll.u32 %s3231_s9, 4  ;;  %s3997_s21 = sld [smem:[#allocation57_spill]] }
  0x42   : > { %3996 = sst [smem:[#allocation25_spill]] %s3995_s19  ;;  %s927_s7 = scalar_lea.vmem [#allocation2], %s2654_s5 }
  0x43   : > { %s935_s28 = sshll.u32 %s927_s7, 4  ;;  %p3490_p4 = pnand %p2914_p1, %p3447_p3  ;;  %s936_s28 = int_to_ptr.vmem [resolvable:$true] %s935_s28 }
  0x44   : > { %p2660_p5 = scmp.ge.s32.totalorder %s3239_s2, 1  ;;  %p973_p6 = scmp.lt.s32.totalorder %s3239_s2, 5 }
  0x45   : > { %s924_s9 = scalar_lea.sflag [#allocation3], %s3477_s26  ;;  %s3241_s4 = smov 64  }
  0x46   : > { %s3242_s19 = smov 4   ;;  %p974_p7 = pnand %p2660_p5, %p973_p6 }
  0x47   : > { %s932_s23 = scalar_lea.hbm %s3997_s21, %s2850_s18  ;;  %s3999_s22 = sld [smem:[#allocation58_spill]] }
  0x48   : > { %s933_s25 = sshll.u32 %s932_s23, 4  ;;  %s949_s24 = scalar_lea.vmem [#allocation5], %s2654_s5  ;;  %s934_s25 = int_to_ptr.hbm [resolvable:$true] %s933_s25 }
  0x49   : > { %2906 = dma.hbm_to_vmem [thread:$0]  (!%p3490_p4), %s934_s25, 256, %s936_s28, %s924_s9, %s3241_s4, %s3241_s4, %s3242_s19  }
  0x4a   : > { %s957_s21 = sshll.u32 %s949_s24, 4  ;;  %s946_s27 = scalar_lea.sflag [#allocation6], %s3477_s26  ;;  %s958_s21 = int_to_ptr.vmem [resolvable:$true] %s957_s21 }
  0x4b   : > { %977 = sbr.rel (%p974_p7) target bundleno = 3515 (0xdbb), region = 124 }
  0x4d   : > { %s954_s30 = scalar_lea.hbm %s3999_s22, %s2850_s18 }
  0x4e   : > { %s955_s1 = sshll.u32 %s954_s30, 4  ;;  %s956_s1 = int_to_ptr.hbm [resolvable:$true] %s955_s1 }
  0x4f   : > { %2909 = dma.hbm_to_vmem [thread:$0]  (!%p3490_p4), %s956_s1, 256, %s958_s21, %s946_s27, %s3241_s4, %s3241_s4, %s3242_s19  }
  0x50   : > { %s979_s2 = sand.u32 1, %s3215_s8  }
  0x51   : > { %s2661_s20 = sshll.u32 %s979_s2, 4  ;;  %s980_s17 = scalar_lea.sflag [#allocation3], %s979_s2 }
  0x52   : > { %s3506_s9 = scalar_lea.vmem [#allocation2], %s2661_s20 }
  0x53   : > { %4000 = sst [smem:[#allocation26_spill]] %s3506_s9 }
  0x54   : > { %3186 = dma.done.wait (%p3457_p8), %s980_s17, 256  }
  0x55   : > { %3188 = vsyncadd (%p3457_p8), %s980_s17, 4294967040  ;;  %s990_s25 = scalar_lea.sflag [#allocation6], %s979_s2  ;;  %s3512_s28 = scalar_lea.vmem [#allocation5], %s2661_s20 }
  0x56   : > { %4001 = sst [smem:[#allocation27_spill]] %s3512_s28 }
  0x57   : > { %3190 = dma.done.wait (%p3457_p8), %s990_s25, 256  }
  0x58   : > { %3192 = vsyncadd (%p3457_p8), %s990_s25, 4294967040  ;;  %s3941_s21 = sand.u32 1, %s3203_s3   ;;  %p1165_p3 = scmp.lt.s32.totalorder %s3227_s0, 1 }
  0x59   : > { %s3522_s27 = sshll.u32 %s3941_s21, 3  ;;  %p1173_p9 = scmp.lt.s32.totalorder %s3223_s29, 1 }
  0x5a   : > { %s1166_s17 = scalar_select %p1165_p3, %s3227_s0, 1 }
  0x5b   : > { %s3527_s20 = scalar_select %p1173_p9, %s3223_s29, 1 }
  0x5c   : > { %s2664_s4 = sshll.u32 %s1166_s17, 3  ;;  %s4002_s26 = sld [smem:[#allocation36_spill]] }
  0x5d   : > { %s4003_s10 = sld [smem:[#allocation37_spill]]  ;;  %s2896_s7 = smul.u32 24, %s3527_s20 }
  0x5e   : > { %s2667_s30 = sshll.u32 %s3527_s20, 1  ;;  %s4005_s25 = sld [smem:[#allocation40_spill]] }
  0x5f   : > { %s4007_s3 = sld [smem:[#allocation41_spill]]  ;;  %s2852_s1 = sshll.u32 %s3527_s20, 4 }
  0x60   : > { %s4009_s6 = sld [smem:[#allocation39_spill]]  ;;  %s2853_s22 = sshll.u32 %s3527_s20, 5 }
  0x61   : > { %s4012_s9 = sld [smem:[#allocation43_spill]]  ;;  %p2697_p8 = scmp.ne.s32.totalorder %s3223_s29, 0 }
  0x62   : > { %s1168_s19 = scalar_lea.vmem %s4002_s26, %s2664_s4  ;;  %s4017_s11 = sld [smem:[#allocation47_spill]] }
  0x63   : > { %s3535_s23 = scalar_lea.vmem %s4003_s10, %s2664_s4  ;;  %s2669_s4 = sshll.u32 %s3527_s20, 3 }
  0x64   : > { %4004 = sst [smem:[#allocation28_spill]] %s3535_s23  ;;  %s3542_s21 = scalar_lea.vmem %s4005_s25, %s2667_s30 }
  0x65   : > { %4006 = sst [smem:[#allocation29_spill]] %s3542_s21  ;;  %s3547_s17 = scalar_lea.vmem %s4007_s3, %s2667_s30 }
  0x66   : > { %4008 = sst [smem:[#allocation30_spill]] %s3547_s17  ;;  %s3552_s26 = scalar_lea.vmem %s4009_s6, %s2896_s7 }
  0x67   : > { %s4010_s10 = sld [smem:[#allocation42_spill]]  ;;  %s3564_s23 = scalar_lea.vmem %s4012_s9, %s2852_s1 }
  0x68   : > { %s4013_s30 = sld [smem:[#allocation44_spill]]  ;;  %s3585_s25 = scalar_lea.vmem %s4017_s11, %s2852_s1 }
  0x69   : > { %s4015_s6 = sld [smem:[#allocation45_spill]] }
  0x6a   : > { %s4018_s12 = sld [smem:[#allocation48_spill]] }
  0x6b   : > { %s4020_s13 = sld [smem:[#allocation49_spill]] }
  0x6c   : > { %s4022_s14 = sld [smem:[#allocation50_spill]] }
  0x6d   : > { %s3558_s28 = scalar_lea.vmem %s4010_s10, %s2669_s4  ;;  %s4016_s10 = sld [smem:[#allocation46_spill]] }
  0x6e   : > { %4011 = sst [smem:[#allocation31_spill]] %s3558_s28  ;;  %s3570_s0 = scalar_lea.vmem %s4013_s30, %s2853_s22 }
  0x6f   : > { %4014 = sst [smem:[#allocation32_spill]] %s3570_s0  ;;  %s3575_s17 = scalar_lea.vmem %s4015_s6, %s2852_s1 }
  0x70   : > { %s3590_s8 = scalar_lea.vmem %s4018_s12, %s2852_s1  ;;  %s4023_s15 = sld [smem:[#allocation51_spill]] }
  0x71   : > { %4019 = sst [smem:[#allocation33_spill]] %s3590_s8  ;;  %s3595_s7 = scalar_lea.vmem %s4020_s13, %s2852_s1 }
  0x72   : > { %4021 = sst [smem:[#allocation34_spill]] %s3595_s7  ;;  %s3600_s5 = scalar_lea.vmem %s4022_s14, %s2852_s1 }
  0x73   : > { %s3580_s28 = scalar_lea.vmem %s4016_s10, %s2852_s1  ;;  %s4025_s16 = sld [smem:[#allocation52_spill]] }
  0x74   : > { %s4026_s0 = sld [smem:[#allocation53_spill]]  ;;  %s2691_s13 = sshll.u32 %s3527_s20, 2 }
  0x75   : > { %s4027_s6 = sld [smem:[#allocation56_spill]]  ;;  %s3639_s20 = scalar_lea.vmem [#allocation7], %s3522_s27 }
  0x76   : > { %s3605_s24 = scalar_lea.vmem %s4023_s15, %s2852_s1  ;;  %s4028_s10 = sld [smem:[#allocation54_spill]] }
  0x77   : > { %4024 = sst [smem:[#allocation35_spill]] %s3605_s24 }
  0x78   : > { %s4030_s3 = sld [smem:[#allocation59_spill]] }
  0x79   : > { %s3610_s21 = scalar_lea.vmem %s4025_s16, %s2669_s4  ;;  %s4029_s4 = sld [smem:[#allocation55_spill]] }
  0x7a   : > { %s3615_s30 = scalar_lea.vmem %s4026_s0, %s2852_s1 }
  0x7b   : > { %s3621_s14 = scalar_lea.vmem %s4027_s6, %s2852_s1  ;;  %1266 = sbr.rel (%p2697_p8) target bundleno = 132 (0x84), region = 136 }
  0x7c   : > { %s3626_s15 = scalar_lea.vmem %s4028_s10, %s2691_s13 }
  0x7e   : > { %s3636_s0 = scalar_lea.vmem %s4030_s3, %s2853_s22 }
  0x7f   : > { %s3631_s9 = scalar_lea.vmem %s4029_s4, %s2691_s13 }
  0x80   : > { %v1267_v0 = vld [vmem:[%s1168_s19] sm:$0xff]  ;;  %vm1269_vm0 = vcmask 261120  }
  0x81   : > { %v1268_v1 = vmul.f32 5.656854, %v1267_v0 }
  0x83   : > { %1270 = vst.msk [vmem:[%s3639_s20] sm:$0xff] %vm1269_vm0, %v1268_v1 }
  0x84 PF: > { %vm1348_vm1 = vcmask 261120   ;;  %v3243_v4 = vmov 32.0   ;;  %v2865_v16 = vld [vmem:[%s3564_s23 + $0x8] sm:$0xff]  ;;  %v2864_v17 = vld [vmem:[%s3564_s23] sm:$0xff]  ;;  %s4031_s13 = sld [smem:[#allocation32_spill]]  ;;  %vm1458_vm10 = vcmask 523264  }
  0x85   : > { %3011 = vrcp.f32 %v3243_v4  ;;  %1405 = vmatpush.bf16.msra.mxu0 %v2865_v16  ;;  %v3657_v26 = vld [vmem:[%s3552_s26] sm:$0xff]  ;;  %s4032_s16 = sld [smem:[#allocation29_spill]]  ;;  %vm1637_vm15 = vcmask 1043456   ;;  %p2845_p10 = scmp.ne.s32.totalorder %s3223_s29, 1 }
  0x86   : > { %v1378_v28 = vperm.slane %v3657_v26, 0  ;;  %v1380_v31 = vperm.slane %v3657_v26, 1  ;;  %v1433_v59 = vperm.slane %v3657_v26, 2  ;;  %s4033_s27 = sld [smem:[#allocation28_spill]] }
  0x87   : > { %s4035_s19 = sld [smem:[#allocation33_spill]] }
  0x88   : > { %s4036_s23 = sld [smem:[#allocation35_spill]] }
  0x89   : > { %1406 = vmatpush.bf16.msra.mxu0 %v2864_v17  ;;  %s4037_s22 = sld [smem:[#allocation38_spill]] }
  0x8a   : > { %v3644_v2 = vld [vmem:[%s3639_s20] sm:$0xff]  ;;  %v2869_v35 = vld [vmem:[%s4031_s13 + $0x18] sm:$0xff]  ;;  %v2868_v36 = vld [vmem:[%s4031_s13 + $0x10] sm:$0xff]  ;;  %s4039_s8 = sld [smem:[#allocation34_spill]] }
  0x8b   : > { %v1349_v3 = vsel %vm1348_vm1, %v3644_v2, 0.0  ;;  %v3012_v5 = vpop.eup %3011  ;;  %1466 = vmatpush.bf16.msra.mxu1 %v2869_v35  ;;  %v3665_v37 = vld [vmem:[%s4032_s16] sm:$0x3]  ;;  %v2867_v38 = vld [vmem:[%s4031_s13 + $0x8] sm:$0xff]  ;;  %s4040_s7 = sld [smem:[#allocation26_spill]] }
  0x8c   : > { %1350 = vadd.xlane.f32.xlu0 %v1349_v3  ;;  %v1353_v6 = vmul.f32 32.0, %v3012_v5  ;;  %vm1357_vm2 = vweird.f32 %v3012_v5  ;;  %v1383_v39 = vperm.slane %v3665_v37, 0  ;;  %v2866_v40 = vld [vmem:[%s4031_s13] sm:$0xff] }
  0x8e   : > { %v1354_v7 = vsub.f32 1.0, %v1353_v6 }
  0x8f   : > { %1467 = vmatpush.bf16.msra.mxu1 %v2868_v36 }
  0x90   : > { %v1355_v8 = vmul.f32 %v3012_v5, %v1354_v7 }
  0x92   : > { %v1356_v9 = vadd.f32 %v3012_v5, %v1355_v8  ;;  %v2871_v8 = vld [vmem:[%s3575_s17 + $0x8] sm:$0xff] }
  0x93   : > { %1468 = vmatpush.bf16.msra.mxu1 %v2867_v38  ;;  %1526 = vmatpush.bf16.msra.mxu2 %v2871_v8 }
  0x94   : > { %v3648_v10 = vsel %vm1357_vm2, %v3012_v5, %v1356_v9  ;;  %v2875_v9 = vld [vmem:[%s3585_s25 + $0x8] sm:$0xff]  ;;  %vm1596_vm2 = vcmask 31744  }
  0x95   : > { %1552 = vmatpush.bf16.msra.mxu3 %v2875_v9  ;;  %v2881_v9 = vld [vmem:[%s3600_s5 + $0x8] sm:$0xff] }
  0x97   : > { %1469 = vmatpush.bf16.msra.mxu1 %v2866_v40 }
  0xff   : > { %v1351_v11 = vpop.xlane.xlu0 %1350 }
 0x100   : > { %v1359_v12 = vmul.f32 %v3648_v10, %v1351_v11  ;;  %v2874_v11 = vld [vmem:[%s3585_s25] sm:$0xff]  ;;  %s4038_s25 = sld [smem:[#allocation31_spill]] }
 0x101   : > { %1553 = vmatpush.bf16.msra.mxu3 %v2874_v11  ;;  %v3723_v11 = vld [vmem:[%s3552_s26 + $0x8] sm:$0xff] }
 0x102   : > { %v1360_v13 = vsub.f32 %v3644_v2, %v1359_v12  ;;  %v2873_v12 = vld [vmem:[%s3580_s28 + $0x8] sm:$0xff] }
 0x103   : > { %1582 = vmatpush.bf16.msrb.mxu0 %v2873_v12 }
 0x104   : > { %v1361_v14 = vmul.f32 %v1360_v13, %v1360_v13 }
 0x106   : > { %v1362_v15 = vsel %vm1348_vm1, %v1361_v14, 0.0 }
 0x107   : > { %1363 = vadd.xlane.f32.xlu0 %v1362_v15  ;;  %v2872_v15 = vld [vmem:[%s3580_s28] sm:$0xff]  ;;  %s4034_s28 = sld [smem:[#allocation30_spill]] }
 0x108   : > { %1583 = vmatpush.bf16.msrb.mxu0 %v2872_v15  ;;  %v1791_v15 = vperm.slane %v3723_v11, 1 }
 0x17a   : > { %v1364_v18 = vpop.xlane.xlu0 %1363 }
 0x17b   : > { %v1365_v19 = vmul.f32 %v1364_v18, %v3648_v10 }
 0x17d   : > { %v1366_v20 = vadd.f32 1e-05, %v1365_v19 }
 0x17f   : > { %3013 = vrsqrt.f32 %v1366_v20  ;;  %vm1373_vm4 = vweird.f32 %v1366_v20 }
 0x185   : > { %v3014_v21 = vpop.eup %3013 }
 0x186   : > { %v1368_v22 = vmul.f32 %v3014_v21, %v1366_v20  ;;  %vm1374_vm3 = vweird.f32 %v3014_v21 }
 0x187   : > { %vm1375_vm5 = vmor %vm1373_vm4, %vm1374_vm3  ;;  %vm1633_vm3 = vcmask 64512   ;;  %vm1654_vm4 = vcmask 257024  }
 0x188   : > { %v1369_v23 = vmul.f32 %v3014_v21, %v1368_v22 }
 0x18a   : > { %v1370_v24 = vmul.f32 0.5, %v1369_v23  ;;  %v1499_v23 = vperm.slane %v3657_v26, 3 }
 0x18c   : > { %v1371_v25 = vsub.f32 1.5, %v1370_v24 }
 0x18e   : > { %v1372_v27 = vmul.f32 %v3014_v21, %v1371_v25 }
 0x190   : > { %v1376_v29 = vsel %vm1375_vm5, %v3014_v21, %v1372_v27  ;;  %v1501_v27 = vperm.slane %v3657_v26, 4 }
 0x191   : > { %v1377_v30 = vmul.f32 %v1376_v29, %v1360_v13 }
 0x193   : > { %v1379_v32 = vmul.f32 %v1378_v28, %v1377_v30 }
 0x195   : > { %v1381_v33 = vadd.f32 %v1380_v31, %v1379_v32  ;;  %v3695_v31 = vld [vmem:[%s4033_s27] sm:$0xff]  ;;  %v3244_v32 = vmov 0  }
 0x196   : > { %3009 = vset.pattern.permute.xlu2 %v3244_v32  ;;  %vm1273_vm14 = vcmp.eq.f32.partialorder %v3695_v31, 0.0 }
 0x197   : > { %v1382_v34 = vpack.c.bf16 %v1381_v33, %v1381_v33  ;;  %v1590_v33 = vsel %vm1273_vm14, 1, %v3244_v32  ;;  %vm1933_vm14 = vcmask 1042432  }
 0x198   : > { %1592 = vperm.xlu2 %3009, %v1590_v33   ;;  %v1533_v33 = vperm.slane %v3657_v26, 6 }
 0x199   : > { %2706 = vmatmul.msk.bf16.vlgmr.msra.gmra.mxu0 %vm1348_vm1, %v1382_v34  ;;  %v1504_v34 = vperm.slane %v3657_v26, 5 }
 0x216   : > { %v1408_v41 = vpop.f32.mrf.mxu0 }
 0x217   : > { %v1409_v42 = vadd.f32 %v1408_v41, %v1383_v39 }
 0x219   : > { %v2707_v43 = vmul.f32 -1.442695, %v1409_v42 }
 0x21b   : > { %3015 = vpow2.f32 %v2707_v43  ;;  %v3710_v43 = vld [vmem:[%s4034_s28] sm:$0x3] }
 0x21e   : > { %v1410_v44 = vpop.f32.mrf.mxu0 }
 0x21f   : > { %v1560_v44 = vperm.slane %v3710_v43, 0 }
 0x221   : > { %v3016_v45 = vpop.eup %3015 }
 0x222   : > { %v1415_v46 = vadd.f32 1.0, %v3016_v45  ;;  %v3713_v45 = vpop.permute.xlu2 %1592 }
 0x223   : > { %vm1594_vm0 = vcmp.eq.s32.totalorder %v3713_v45, 1 }
 0x224   : > { %3017 = vrcp.f32 %v1415_v46  ;;  %v1427_v50 = vand.u32 2147483648, %v1415_v46  ;;  %v1425_v52 = vand.u32 2147483647, %v1415_v46  ;;  %vm1421_vm7 = vweird.f32 %v1415_v46 }
 0x226   : > { %v1428_v54 = vor.u32 1.1754944e-38, %v1427_v50  ;;  %vm1426_vm9 = vcmp.eq.f32.partialorder %v1425_v52, 8.507059e+37 }
 0x22a   : > { %v3018_v47 = vpop.eup %3017 }
 0x22b   : > { %v1417_v48 = vmul.f32 %v3018_v47, %v1415_v46  ;;  %vm1422_vm6 = vweird.f32 %v3018_v47 }
 0x22c   : > { %vm1423_vm8 = vmor %vm1421_vm7, %vm1422_vm6 }
 0x22d   : > { %v1418_v49 = vsub.f32 1.0, %v1417_v48 }
 0x22f   : > { %v1419_v51 = vmul.f32 %v3018_v47, %v1418_v49 }
 0x231   : > { %v1420_v53 = vadd.f32 %v3018_v47, %v1419_v51 }
 0x233   : > { %v1424_v55 = vsel %vm1423_vm8, %v3018_v47, %v1420_v53  ;;  %vm1898_vm8 = vcmask 1046528  }
 0x234   : > { %v1429_v56 = vsel %vm1426_vm9, %v1428_v54, %v1424_v55  ;;  %vm1905_vm9 = vcmask 1040384  }
 0x235   : > { %v1431_v57 = vmul.f32 %v1429_v56, %v1409_v42 }
 0x237   : > { %v1432_v58 = vpack.c.bf16 %v1431_v57, %v1431_v57 }
 0x239   : > { %2724 = vmatmul.msk.bf16.vlgmr.msra.gmra.mxu1 %vm1458_vm10, %v1432_v58 }
 0x2b6   : > { %v1471_v60 = vpop.f32.mrf.mxu1 }
 0x2b7   : > { %v1472_v61 = vadd.f32 %v1471_v60, %v1433_v59 }
 0x2b9   : > { %v1475_v62 = vmul.f32 0.5, %v1472_v61 }
 0x2bb   : > { %v3673_v63 = vadd.f32 %v1475_v62, %v3644_v2  ;;  %v2870_v2 = vld [vmem:[%s3575_s17] sm:$0xff] }
 0x2bc   : > { %1527 = vmatpush.bf16.msra.mxu2 %v2870_v2  ;;  %v2880_v2 = vld [vmem:[%s3600_s5] sm:$0xff] }
 0x2bd   : > { %v1477_v0 = vsel %vm1348_vm1, %v3673_v63, 0.0 }
 0x2be   : > { %v1473_v1 = vpop.f32.mrf.mxu1  ;;  %1478 = vadd.xlane.f32.xlu1 %v1477_v0 }
 0x331   : > { %v1479_v3 = vpop.xlane.xlu1 %1478 }
 0x332   : > { %v1480_v4 = vmul.f32 %v1479_v3, %v3648_v10 }
 0x334   : > { %v1481_v5 = vsub.f32 %v3673_v63, %v1480_v4 }
 0x336   : > { %v1482_v6 = vmul.f32 %v1481_v5, %v1481_v5 }
 0x338   : > { %v1483_v7 = vsel %vm1348_vm1, %v1482_v6, 0.0 }
 0x339   : > { %1484 = vadd.xlane.f32.xlu1 %v1483_v7 }
 0x3ac   : > { %v1485_v13 = vpop.xlane.xlu1 %1484 }
 0x3ad   : > { %v1486_v14 = vmul.f32 %v1485_v13, %v3648_v10  ;;  %v1789_v13 = vperm.slane %v3723_v11, 0 }
 0x3af   : > { %v1487_v16 = vadd.f32 1e-05, %v1486_v14 }
 0x3b1   : > { %3019 = vrsqrt.f32 %v1487_v16  ;;  %vm1494_vm12 = vweird.f32 %v1487_v16 }
 0x3b7   : > { %v3020_v17 = vpop.eup %3019 }
 0x3b8   : > { %v1489_v18 = vmul.f32 %v3020_v17, %v1487_v16  ;;  %vm1495_vm11 = vweird.f32 %v3020_v17 }
 0x3b9   : > { %vm1496_vm13 = vmor %vm1494_vm12, %vm1495_vm11  ;;  %vm1912_vm11 = vcmask 1045504   ;;  %vm1919_vm12 = vcmask 1041408  }
 0x3ba   : > { %v1490_v19 = vmul.f32 %v3020_v17, %v1489_v18  ;;  %v2877_v18 = vld [vmem:[%s4035_s19 + $0x8] sm:$0xff] }
 0x3bb   : > { %1686 = vmatpush.bf16.msrb.mxu3 %v2877_v18 }
 0x3bc   : > { %v1491_v20 = vmul.f32 0.5, %v1490_v19  ;;  %v2876_v19 = vld [vmem:[%s4035_s19] sm:$0xff] }
 0x3be   : > { %v1492_v21 = vsub.f32 1.5, %v1491_v20  ;;  %v2883_v20 = vld [vmem:[%s4036_s23 + $0x8] sm:$0xff] }
 0x3bf   : > { %1687 = vmatpush.bf16.msrb.mxu3 %v2876_v19 }
 0x3c0   : > { %v1493_v22 = vmul.f32 %v3020_v17, %v1492_v21  ;;  %v3736_v21 = vld [vmem:[%s4037_s22] sm:$0xf] }
 0x3c2   : > { %v1497_v24 = vsel %vm1496_vm13, %v3020_v17, %v1493_v22  ;;  %v2882_v22 = vld [vmem:[%s4036_s23] sm:$0xff]  ;;  %vm1926_vm13 = vcmask 1044480  }
 0x3c3   : > { %v3688_v25 = vmul.f32 %v1497_v24, %v1481_v5 }
 0x3c5   : > { %v1500_v28 = vmul.f32 %v1499_v23, %v3688_v25  ;;  %v1790_v14 = vmul.f32 %v1789_v13, %v3688_v25 }
 0x3c7   : > { %v1502_v29 = vadd.f32 %v1501_v27, %v1500_v28  ;;  %v1792_v16 = vadd.f32 %v1791_v15, %v1790_v14 }
 0x3c9   : > { %v1503_v30 = vpack.c.bf16 %v1502_v29, %v1502_v29  ;;  %v1793_v17 = vpack.c.bf16 %v1792_v16, %v1792_v16 }
 0x3cb   : > { %2733 = vmatmul.msk.bf16.vlgmr.msra.gmra.mxu2 %vm1348_vm1, %v1503_v30  ;;  %2742 = vmatmul.msk.bf16.vlgmr.msra.gmra.mxu3 %vm1348_vm1, %v1503_v30 }
 0x3cc   : > { %1851 = vmatpush.bf16.msra.mxu3 %v2883_v20 }
 0x3d0   : > { %1852 = vmatpush.bf16.msra.mxu3 %v2882_v22 }
 0x44e   : > { %v1529_v35 = vpop.f32.mrf.mxu2  ;;  %v3701_v36 = vpop.f32.mrf.mxu3 }
 0x44f   : > { %v3703_v38 = vadd.f32 %v1529_v35, %v1504_v34 }
 0x451   : > { %v1559_v39 = vpack.c.bf16 %v3703_v38, %v3703_v38 }
 0x453   : > { %2751 = vmatmul.msk.bf16.vlgmr.msrb.gmra.mxu0 %vm1348_vm1, %v1559_v39  ;;  %v1638_v40 = vsel %vm1637_vm15, %v1559_v39, 0  ;;  %v1556_v39 = vadd.f32 %v3701_v36, %v1533_v33 }
 0x454   : > { %1647 = vmatpush.bf16.msrb.mxu2 %v1638_v40 }
 0x456   : > { %v1531_v41 = vpop.f32.mrf.mxu2  ;;  %v1557_v42 = vpop.f32.mrf.mxu3 }
 0x458   : > { %1816 = vmatpush.bf16.msra.mxu2 %v2881_v9 }
 0x45c   : > { %1817 = vmatpush.bf16.msra.mxu2 %v2880_v2 }
 0x4d0   : > { %v1585_v46 = vpop.f32.mrf.mxu0 }
 0x4d1   : > { %v1586_v47 = vadd.f32 %v1585_v46, %v1560_v44 }
 0x4d3   : > { %v1589_v48 = vmul.f32 0.35355338, %v1586_v47 }
 0x4d5   : > { %v1595_v49 = vsel %vm1594_vm0, -3.4028235e+38, %v1589_v48  ;;  %v1664_v48 = vperm.slane %v3710_v43, 1 }
 0x4d6   : > { %v1597_v50 = vsel %vm1596_vm2, %v1595_v49, -inf }
 0x4d7   : > { %v1598_v51 = vrot.slane %v1597_v50, 4 }
 0x4d8   : > { %v1587_v52 = vpop.f32.mrf.mxu0 }
 0x4d9   : > { %v1599_v53 = vmax.f32 %v1597_v50, %v1598_v51 }
 0x4db   : > { %v1600_v54 = vrot.slane %v1599_v53, 2 }
 0x4dd   : > { %v1601_v55 = vmax.f32 %v1599_v53, %v1600_v54 }
 0x4df   : > { %v1602_v56 = vrot.slane %v1601_v55, 1 }
 0x4e1   : > { %v1603_v57 = vmax.f32 %v1601_v55, %v1602_v56 }
 0x4e3   : > { %v1604_v58 = vsub.f32 %v1595_v49, %v1603_v57  ;;  %v3753_v57 = vld [vmem:[%s4038_s25] sm:$0x1f] }
 0x4e5   : > { %v1605_v59 = vmul.f32 1.442695, %v1604_v58 }
 0x4e7   : > { %3021 = vpow2.f32 %v1605_v59  ;;  %v1832_v59 = vperm.slane %v3753_v57, 1 }
 0x4ed   : > { %v3022_v60 = vpop.eup %3021 }
 0x4ee   : > { %v1607_v61 = vsel %vm1596_vm2, %v3022_v60, 0.0 }
 0x4ef   : > { %v1608_v62 = vrot.slane %v1607_v61, 4 }
 0x4f1   : > { %v1609_v0 = vadd.f32 %v1608_v62, %v1607_v61 }
 0x4f3   : > { %v1610_v1 = vrot.slane %v1609_v0, 2 }
 0x4f5   : > { %v1611_v3 = vadd.f32 %v1610_v1, %v1609_v0 }
 0x4f7   : > { %v1612_v4 = vrot.slane %v1611_v3, 1 }
 0x4f9   : > { %v1613_v5 = vadd.f32 %v1612_v4, %v1611_v3 }
 0x4fb   : > { %3023 = vrcp.f32 %v1613_v5 }
 0x501   : > { %v3024_v6 = vpop.eup %3023 }
 0x502   : > { %v1615_v7 = vmul.f32 %v3024_v6, %v3022_v60 }
 0x504   : > { %v1616_v8 = vpack.c.bf16 %v1615_v7, %v1615_v7 }
 0x506   : > { %1617 = vxpose.xlu2.c.b16.start.end [1/1] (short) (narrow) %v1616_v8, 16 }
 0x5a7   : > { %v1625_v12 = vpop.trf.xlu2 }
 0x5a8   : > { %2752 = vmatmul.msk.bf16.vlgmr.msrb.gmra.mxu2 %vm1633_vm3, %v1625_v12 }
 0x5b8   : > { %2780 = vmatmul.msk.bf16.vlgmr.msra.gmra.mxu2 %vm1348_vm1, %v1793_v17 }
 0x62b   : > { %v1649_v23 = vpop.f32.mrf.mxu2 }
 0x62c   : > { %v1653_v24 = vmul.f32 %v1649_v23, %v3736_v21 }
 0x62e   : > { %v1655_v25 = vsel %vm1654_vm4, %v1653_v24, 0.0 }
 0x62f   : > { %v1656_v27 = vrot.slane %v1655_v25, 4 }
 0x631   : > { %v1657_v28 = vadd.f32 %v1656_v27, %v1655_v25 }
 0x633   : > { %v1658_v29 = vrot.slane %v1657_v28, 2  ;;  %v1651_v30 = vpop.f32.mrf.mxu2 }
 0x635   : > { %v1659_v34 = vadd.f32 %v1658_v29, %v1657_v28 }
 0x637   : > { %v1660_v35 = vrot.slane %v1659_v34, 1 }
 0x639   : > { %v1661_v40 = vadd.f32 %v1660_v35, %v1659_v34 }
 0x63b   : > { %v3743_v41 = vpop.f32.mrf.mxu2  ;;  %v1662_v42 = vmul.f32 %v1661_v40, %v1556_v39 }
 0x63d   : > { %v1663_v44 = vpack.c.bf16 %v1662_v42, %v1662_v42 }
 0x63f   : > { %2761 = vmatmul.msk.bf16.vlgmr.msrb.gmra.mxu3 %vm1348_vm1, %v1663_v44  ;;  %v1734_v46 = vsel %vm1637_vm15, %v1663_v44, 0 }
 0x640   : > { %1743 = vmatpush.bf16.msrb.mxu1 %v1734_v46 }
 0x643   : > { %v1821_v47 = vpop.f32.mrf.mxu2 }
 0x64f   : > { %2789 = vmatmul.msk.bf16.vlgmr.msra.gmra.mxu3 %vm1348_vm1, %v1793_v17 }
 0x6c2   : > { %v1689_v49 = vpop.f32.mrf.mxu3 }
 0x6c3   : > { %v1690_v50 = vadd.f32 %v1689_v49, %v1664_v48  ;;  %v1889_v49 = vperm.slane %v3753_v57, 2 }
 0x6c5   : > { %v1693_v51 = vmul.f32 0.35355338, %v1690_v50 }
 0x6c7   : > { %v1694_v36 = vsel %vm1594_vm0, -3.4028235e+38, %v1693_v51  ;;  %v1891_v51 = vperm.slane %v3753_v57, 3 }
 0x6c8   : > { %v1695_v52 = vsel %vm1596_vm2, %v1694_v36, -inf }
 0x6c9   : > { %v1696_v53 = vrot.slane %v1695_v52, 4 }
 0x6ca   : > { %v1691_v54 = vpop.f32.mrf.mxu3 }
 0x6cb   : > { %v1697_v55 = vmax.f32 %v1695_v52, %v1696_v53  ;;  %v1320_v53 = vld [vmem:[%s3610_s21] sm:$0x7f]  ;;  %s4043_s21 = sld [smem:[#allocation61_spill]] (!%p2845_p10) }
 0x6cd   : > { %v1698_v56 = vrot.slane %v1697_v55, 2 }
 0x6cf   : > { %v1699_v58 = vmax.f32 %v1697_v55, %v1698_v56  ;;  %v1893_v55 = vperm.slane %v1320_v53, 3  ;;  %v1900_v56 = vperm.slane %v1320_v53, 4 }
 0x6d1   : > { %v1700_v60 = vrot.slane %v1699_v58, 1 }
 0x6d2   : > { %v1854_v61 = vpop.f32.mrf.mxu3 }
 0x6d3   : > { %v1701_v43 = vmax.f32 %v1699_v58, %v1700_v60  ;;  %v1855_v62 = vadd.f32 %v1854_v61, %v1832_v59  ;;  %v1794_v58 = vperm.slane %v3753_v57, 0 }
 0x6d5   : > { %v1702_v0 = vsub.f32 %v1694_v36, %v1701_v43  ;;  %v1858_v1 = vmul.f32 %v1855_v62, %v1855_v62  ;;  %v1907_v43 = vperm.slane %v1320_v53, 2 }
 0x6d7   : > { %v1703_v3 = vmul.f32 1.442695, %v1702_v0  ;;  %v1859_v45 = vmul.f32 %v1858_v1, %v1855_v62 }
 0x6d9   : > { %3025 = vpow2.f32 %v1703_v3  ;;  %v1860_v4 = vmul.f32 0.044715, %v1859_v45 }
 0x6da   : > { %v1856_v5 = vpop.f32.mrf.mxu3 }
 0x6db   : > { %v1861_v6 = vadd.f32 %v1860_v4, %v1855_v62  ;;  %v1914_v4 = vperm.slane %v1320_v53, 5  ;;  %v3770_v5 = vadd.f32 %v3743_v41, %v1794_v58 }
 0x6dd   : > { %v1862_v7 = vmul.f32 0.7978846, %v1861_v6 }
 0x6df   : > { %v3026_v8 = vpop.eup %3025  ;;  %3027 = vtanh.f32 %v1862_v7 }
 0x6e0   : > { %v1705_v9 = vsel %vm1596_vm2, %v3026_v8, 0.0 }
 0x6e1   : > { %v1706_v2 = vrot.slane %v1705_v9, 4 }
 0x6e3   : > { %v1707_v12 = vadd.f32 %v1706_v2, %v1705_v9  ;;  %v1921_v2 = vperm.slane %v1320_v53, 1 }
 0x6e5   : > { %v3028_v13 = vpop.eup %3027  ;;  %v1708_v14 = vrot.slane %v1707_v12, 2 }
 0x6e6   : > { %v1864_v15 = vadd.f32 1.0, %v3028_v13 }
 0x6e7   : > { %v1709_v16 = vadd.f32 %v1708_v14, %v1707_v12 }
 0x6e8   : > { %v1865_v17 = vmul.f32 0.5, %v1864_v15 }
 0x6e9   : > { %v1710_v18 = vrot.slane %v1709_v16, 1 }
 0x6ea   : > { %v1866_v19 = vmul.f32 %v1865_v17, %v1855_v62 }
 0x6eb   : > { %v1711_v20 = vadd.f32 %v1710_v18, %v1709_v16  ;;  %v1928_v16 = vperm.slane %v1320_v53, 6  ;;  %v1823_v18 = vmul.f32 %v3770_v5, %v3770_v5 }
 0x6ec   : > { %v1867_v22 = vsel %vm1348_vm1, %v1866_v19, 0.0 }
 0x6ed   : > { %1868 = vadd.xlane.f32.xlu1 %v1867_v22  ;;  %3029 = vrcp.f32 %v1711_v20  ;;  %v1935_v20 = vperm.slane %v1320_v53, 0 }
 0x6f3   : > { %v3030_v23 = vpop.eup %3029 }
 0x6f4   : > { %v1713_v24 = vmul.f32 %v3030_v23, %v3026_v8 }
 0x6f6   : > { %v1714_v25 = vpack.c.bf16 %v1713_v24, %v1713_v24 }
 0x6f8   : > { %1715 = vxpose.xlu0.c.b16.start.end [1/1] (short) (narrow) %v1714_v25, 16  ;;  %v2885_v25 = vld [vmem:[%s3615_s30 + $0x8] sm:$0xff] }
 0x6f9   : > { %1984 = vmatpush.bf16.msra.mxu1 %v2885_v25 }
 0x75f   : > { %3010 = vset.pattern.permute.xlu0 %v3244_v32 }
 0x760   : > { %v1869_v27 = vpop.xlane.xlu1 %1868 }
 0x761   : > { %v1870_v28 = vmul.f32 %v1869_v27, %v3648_v10  ;;  %v1824_v27 = vmul.f32 %v1823_v18, %v3770_v5  ;;  %v1326_v18 = vld [vmem:[%s3631_s9] sm:$0x7] }
 0x762   : > { %v2021_v25 = vperm.slane %v1326_v18, 0 }
 0x763   : > { %v1871_v29 = vsub.f32 %v1866_v19, %v1870_v28  ;;  %v1938_v28 = vperm.slane %v3753_v57, 4 }
 0x765   : > { %v1872_v30 = vmul.f32 %v1871_v29, %v1871_v29 }
 0x767   : > { %v1873_v33 = vsel %vm1348_vm1, %v1872_v30, 0.0 }
 0x768   : > { %1874 = vadd.xlane.f32.xlu1 %v1873_v33 }
 0x7a4   : > { %v1723_v34 = vpop.trf.xlu0 }
 0x7a5   : > { %2762 = vmatmul.msk.bf16.vlgmr.msrb.gmra.mxu1 %vm1633_vm3, %v1723_v34  ;;  %v2884_v34 = vld [vmem:[%s3615_s30] sm:$0xff] }
 0x7a6   : > { %1985 = vmatpush.bf16.msra.mxu1 %v2884_v34 }
 0x7db   : > { %v1875_v35 = vpop.xlane.xlu1 %1874 }
 0x7dc   : > { %v1876_v39 = vmul.f32 %v1875_v35, %v3648_v10  ;;  %v1825_v35 = vmul.f32 0.044715, %v1824_v27 }
 0x7de   : > { %v1877_v40 = vadd.f32 1e-05, %v1876_v39 }
 0x7e0   : > { %3031 = vrsqrt.f32 %v1877_v40  ;;  %vm1884_vm6 = vweird.f32 %v1877_v40 }
 0x7e6   : > { %v3032_v42 = vpop.eup %3031 }
 0x7e7   : > { %v1879_v44 = vmul.f32 %v3032_v42, %v1877_v40  ;;  %vm1885_vm5 = vweird.f32 %v3032_v42 }
 0x7e8   : > { %vm1886_vm7 = vmor %vm1884_vm6, %vm1885_vm5 }
 0x7e9   : > { %v1880_v32 = vmul.f32 %v3032_v42, %v1879_v44  ;;  %v2879_v44 = vld [vmem:[%s4039_s8 + $0x8] sm:$0xff] }
 0x7ea   : > { %1781 = vmatpush.bf16.msra.mxu0 %v2879_v44 }
 0x7eb   : > { %v1881_v46 = vmul.f32 0.5, %v1880_v32 }
 0x7ed   : > { %v1882_v47 = vsub.f32 1.5, %v1881_v46 }
 0x7ef   : > { %v1883_v48 = vmul.f32 %v3032_v42, %v1882_v47  ;;  %v2878_v47 = vld [vmem:[%s4039_s8] sm:$0xff] }
 0x7f0   : > { %1782 = vmatpush.bf16.msra.mxu0 %v2878_v47 }
 0x7f1   : > { %v1887_v50 = vsel %vm1886_vm7, %v3032_v42, %v1883_v48  ;;  %v1826_v42 = vadd.f32 %v1825_v35, %v3770_v5 }
 0x7f2   : > { %v1888_v36 = vmul.f32 %v1887_v50, %v1871_v29 }
 0x7f3   : > { %v1827_v32 = vmul.f32 0.7978846, %v1826_v42 }
 0x7f4   : > { %v1890_v52 = vmul.f32 %v1889_v49, %v1888_v36 }
 0x7f6   : > { %v1892_v54 = vadd.f32 %v1891_v51, %v1890_v52 }
 0x7f8   : > { %v1896_v59 = vrot.slane %v1892_v54, 1  ;;  %v1903_v60 = vrot.slane %v1892_v54, 7  ;;  %v1910_v61 = vrot.slane %v1892_v54, 2  ;;  %v1917_v1 = vrot.slane %v1892_v54, 6 }
 0x7f9   : > { %v1894_v3 = vmul.f32 %v1893_v55, %v1892_v54  ;;  %v1924_v7 = vrot.slane %v1892_v54, 3  ;;  %v1931_v13 = vrot.slane %v1892_v54, 5 }
 0x7fa   : > { %v1899_v62 = vsel %vm1898_vm8, %v1896_v59, 0.0  ;;  %v1906_v0 = vsel %vm1905_vm9, 0.0, %v1903_v60  ;;  %v1913_v6 = vsel %vm1912_vm11, %v1910_v61, 0.0  ;;  %v1920_v12 = vsel %vm1919_vm12, 0.0, %v1917_v1 }
 0x7fb   : > { %v1901_v45 = vmul.f32 %v1900_v56, %v1899_v62  ;;  %v1908_v9 = vmul.f32 %v1907_v43, %v1906_v0  ;;  %v1915_v15 = vmul.f32 %v1914_v4, %v1913_v6  ;;  %v1927_v17 = vsel %vm1926_vm13, %v1924_v7, 0.0 }
 0x7fc   : > { %v1922_v19 = vmul.f32 %v1921_v2, %v1920_v12  ;;  %v1934_v22 = vsel %vm1933_vm14, 0.0, %v1931_v13  ;;  %v1929_v24 = vmul.f32 %v1928_v16, %v1927_v17  ;;  %v2886_v16 = vld [vmem:[%s3621_s14] sm:$0xff]  ;;  %v1962_v17 = vperm.slane %v3723_v11, 2 }
 0x7fd   : > { %v1902_v8 = vadd.f32 %v1901_v45, %v1894_v3  ;;  %v1936_v30 = vmul.f32 %v1935_v20, %v1934_v22  ;;  %v2009_v20 = vperm.slane %v1326_v18, 1  ;;  %v2015_v22 = vperm.slane %v1326_v18, 2 }
 0x7ff   : > { %v1909_v14 = vadd.f32 %v1908_v9, %v1902_v8 }
 0x801   : > { %v1916_v41 = vadd.f32 %v1915_v15, %v1909_v14  ;;  %v2888_v14 = vld [vmem:[%s4040_s7] sm:$0xff]  ;;  %v2887_v15 = vld [vmem:[%s3621_s14 + $0x8] sm:$0xff]  ;;  %s4041_s14 = sld [smem:[#allocation27_spill]] }
 0x802   : > { %2078 = vmatpush.bf16.msrb.mxu2 %v2887_v15 }
 0x803   : > { %v1923_v23 = vadd.f32 %v1922_v19, %v1916_v41 }
 0x805   : > { %v1930_v29 = vadd.f32 %v1929_v24, %v1923_v23 }
 0x806   : > { %2079 = vmatpush.bf16.msrb.mxu2 %v2886_v16 }
 0x807   : > { %v1937_v33 = vadd.f32 %v1936_v30, %v1930_v29  ;;  %v2891_v15 = vld [vmem:[%s4041_s14 + $0x8] sm:$0xff]  ;;  %v2890_v16 = vld [vmem:[%s4041_s14] sm:$0xff] }
 0x808   : > { %2137 = vmatpush.bf16.msrb.mxu3 %v2891_v15 }
 0x809   : > { %v1939_v39 = vadd.f32 %v1938_v28, %v1937_v33  ;;  %v1759_v33 = vperm.slane %v3657_v26, 7 }
 0x80b   : > { %v2790_v40 = vmul.f32 -1.442695, %v1939_v39 }
 0x80c   : > { %2138 = vmatpush.bf16.msrb.mxu3 %v2890_v16 }
 0x80d   : > { %3033 = vpow2.f32 %v2790_v40 }
 0x80e   : > { %3035 = vtanh.f32 %v1827_v32  ;;  %v1325_v32 = vld [vmem:[%s3626_s15] sm:$0x7] }
 0x813   : > { %v3034_v46 = vpop.eup %3033 }
 0x814   : > { %v1943_v48 = vadd.f32 1.0, %v3034_v46  ;;  %v3036_v57 = vpop.eup %3035 }
 0x815   : > { %v1829_v51 = vadd.f32 1.0, %v3036_v57  ;;  %v1991_v57 = vperm.slane %v1325_v32, 1 }
 0x816   : > { %3037 = vrcp.f32 %v1943_v48  ;;  %v1955_v52 = vand.u32 2147483648, %v1943_v48  ;;  %v1953_v54 = vand.u32 2147483647, %v1943_v48  ;;  %vm1949_vm0 = vweird.f32 %v1943_v48 }
 0x817   : > { %v1830_v56 = vmul.f32 0.5, %v1829_v51 }
 0x818   : > { %v1956_v60 = vor.u32 1.1754944e-38, %v1955_v52  ;;  %vm1954_vm3 = vcmp.eq.f32.partialorder %v1953_v54, 8.507059e+37  ;;  %v2003_v52 = vperm.slane %v1325_v32, 0 }
 0x819   : > { %v1831_v1 = vmul.f32 %v1830_v56, %v3770_v5  ;;  %v2889_v5 = vld [vmem:[%s4040_s7 + $0x8] sm:$0xff] }
 0x81a   : > { %2050 = vmatpush.bf16.msrb.mxu0 %v2889_v5 }
 0x81c   : > { %v3038_v49 = vpop.eup %3037 }
 0x81d   : > { %v1945_v50 = vmul.f32 %v3038_v49, %v1943_v48  ;;  %vm1950_vm15 = vweird.f32 %v3038_v49 }
 0x81e   : > { %vm1951_vm2 = vmor %vm1949_vm0, %vm1950_vm15  ;;  %2051 = vmatpush.bf16.msrb.mxu0 %v2888_v14 }
 0x81f   : > { %v1946_v36 = vsub.f32 1.0, %v1945_v50 }
 0x821   : > { %v1947_v53 = vmul.f32 %v3038_v49, %v1946_v36 }
 0x822   : > { %v1745_v55 = vpop.f32.mrf.mxu1 }
 0x823   : > { %v1749_v58 = vmul.f32 %v1745_v55, %v3736_v21  ;;  %v1948_v59 = vadd.f32 %v3038_v49, %v1947_v53 }
 0x825   : > { %v1750_v61 = vsel %vm1654_vm4, %v1749_v58, 0.0  ;;  %v1952_v43 = vsel %vm1951_vm2, %v3038_v49, %v1948_v59  ;;  %v1997_v49 = vperm.slane %v1325_v32, 2  ;;  %v2892_v32 = vld [vmem:[%s3636_s0] sm:$0xff] }
 0x826   : > { %v1751_v62 = vrot.slane %v1750_v61, 4  ;;  %v1957_v0 = vsel %vm1954_vm3, %v1956_v60, %v1952_v43 }
 0x827   : > { %v1959_v3 = vmul.f32 %v1957_v0, %v1939_v39  ;;  %v2024_v39 = vperm.slane %v3723_v11, 4 }
 0x828   : > { %v1752_v45 = vadd.f32 %v1751_v62, %v1750_v61 }
 0x829   : > { %v1960_v4 = vmul.f32 %v1959_v3, %v1831_v1 }
 0x82a   : > { %v1753_v6 = vrot.slane %v1752_v45, 2  ;;  %v1747_v21 = vpop.f32.mrf.mxu1 }
 0x82b   : > { %v1961_v7 = vpack.c.bf16 %v1960_v4, %v1960_v4 }
 0x82c   : > { %v1754_v8 = vadd.f32 %v1753_v6, %v1752_v45  ;;  %v2085_v45 = vperm.slane %v3723_v11, 5 }
 0x82d   : > { %2799 = vmatmul.msk.bf16.vlgmr.msra.gmra.mxu1 %vm1348_vm1, %v1961_v7 }
 0x82e   : > { %v1755_v9 = vrot.slane %v1754_v8, 1 }
 0x830   : > { %v1756_v2 = vadd.f32 %v1755_v9, %v1754_v8 }
 0x832   : > { %v1757_v12 = vmul.f32 %v1756_v2, %v3703_v38 }
 0x834   : > { %v1758_v13 = vpack.c.bf16 %v1757_v12, %v1757_v12 }
 0x836   : > { %2771 = vmatmul.msk.bf16.vlgmr.msra.gmra.mxu0 %vm1348_vm1, %v1758_v13 }
 0x8aa   : > { %v1987_v41 = vpop.f32.mrf.mxu1 }
 0x8ab   : > { %v1988_v19 = vadd.f32 %v1987_v41, %v1962_v17 }
 0x8ad   : > { %v2012_v23 = vrot.slane %v1988_v19, 1  ;;  %v2018_v24 = vrot.slane %v1988_v19, 7  ;;  %v2010_v29 = vmul.f32 %v2009_v20, %v1988_v19 }
 0x8af   : > { %v2014_v27 = vsel %vm1898_vm8, %v2012_v23, 0.0  ;;  %v2020_v28 = vsel %vm1905_vm9, 0.0, %v2018_v24 }
 0x8b0   : > { %v2016_v30 = vmul.f32 %v2015_v22, %v2014_v27  ;;  %v2022_v35 = vmul.f32 %v2021_v25, %v2020_v28  ;;  %v2110_v25 = vperm.slane %v3723_v11, 6 }
 0x8b2   : > { %v2017_v34 = vadd.f32 %v2016_v30, %v2010_v29  ;;  %v1989_v40 = vpop.f32.mrf.mxu1  ;;  %v2112_v29 = vperm.slane %v3723_v11, 7 }
 0x8b3   : > { %v1784_v42 = vpop.f32.mrf.mxu0  ;;  %v2893_v40 = vld [vmem:[%s3636_s0 + $0x8] sm:$0xff] }
 0x8b4   : > { %v2023_v44 = vadd.f32 %v2022_v35, %v2017_v34  ;;  %v1785_v46 = vadd.f32 %v1784_v42, %v1759_v33  ;;  %v2895_v35 = vld [vmem:[%s3636_s0 + $0x18] sm:$0xff]  ;;  %v2115_v42 = vperm.slane %v3665_v37, 1 }
 0x8b5   : > { %2197 = vmatpush.bf16.msrb.mxu1 %v2895_v35 }
 0x8b6   : > { %v2025_v47 = vadd.f32 %v2024_v39, %v2023_v44  ;;  %v1788_v48 = vadd.f32 %v1785_v46, %v3703_v38  ;;  %v2006_v38 = vperm.slane %v3723_v11, 3  ;;  %v2894_v39 = vld [vmem:[%s3636_s0 + $0x10] sm:$0xff] }
 0x8b8   : > { %v2026_v50 = vadd.f32 %v2025_v47, %v1988_v19  ;;  %v1994_v51 = vrot.slane %v1788_v48, 1  ;;  %v2000_v36 = vrot.slane %v1788_v48, 7  ;;  %v1992_v55 = vmul.f32 %v1991_v57, %v1788_v48 }
 0x8b9   : > { %2198 = vmatpush.bf16.msrb.mxu1 %v2894_v39 }
 0x8ba   : > { %v2028_v53 = vpack.c.bf16 %v2026_v50, %v2026_v50  ;;  %v1996_v26 = vsel %vm1898_vm8, %v1994_v51, 0.0  ;;  %v2002_v54 = vsel %vm1905_vm9, 0.0, %v2000_v36 }
 0x8bb   : > { %v1998_v56 = vmul.f32 %v1997_v49, %v1996_v26  ;;  %v1786_v58 = vpop.f32.mrf.mxu0  ;;  %v2004_v60 = vmul.f32 %v2003_v52, %v2002_v54 }
 0x8bc   : > { %2808 = vmatmul.msk.bf16.vlgmr.msrb.gmra.mxu0 %vm1348_vm1, %v2028_v53 }
 0x8bd   : > { %v1999_v59 = vadd.f32 %v1998_v56, %v1992_v55  ;;  %2199 = vmatpush.bf16.msrb.mxu1 %v2893_v40 }
 0x8bf   : > { %v2005_v61 = vadd.f32 %v2004_v60, %v1999_v59  ;;  %v1276_v59 = vld [vmem:[%s3552_s26 + $0x10] sm:$0x7]  ;;  %s4042_s26 = sld [smem:[#allocation60_spill]] (!%p2845_p10) }
 0x8c0   : > { %v2165_v60 = vperm.slane %v1276_v59, 0  ;;  %v2230_v16 = vperm.slane %v1276_v59, 1 }
 0x8c1   : > { %v2007_v43 = vadd.f32 %v2006_v38, %v2005_v61  ;;  %2200 = vmatpush.bf16.msrb.mxu1 %v2892_v32 }
 0x8c3   : > { %v2008_v62 = vadd.f32 %v2007_v43, %v1788_v48 }
 0x8c5   : > { %v2027_v0 = vpack.c.bf16 %v2008_v62, %v2008_v62 }
 0x8c7   : > { %2817 = vmatmul.msk.bf16.vlgmr.msrb.gmra.mxu2 %vm1348_vm1, %v2027_v0 }
 0x939   : > { %v2053_v1 = vpop.f32.mrf.mxu0 }
 0x941   : > { %v2055_v3 = vpop.f32.mrf.mxu0 }
 0x94a   : > { %v2081_v4 = vpop.f32.mrf.mxu2 }
 0x94b   : > { %v2082_v6 = vadd.f32 %v2081_v4, %v2053_v1 }
 0x94d   : > { %v2086_v21 = vadd.f32 %v2085_v45, %v2082_v6 }
 0x94f   : > { %v3806_v7 = vadd.f32 %v2086_v21, %v3673_v63 }
 0x951   : > { %v2088_v8 = vsel %vm1348_vm1, %v3806_v7, 0.0 }
 0x952   : > { %v2083_v9 = vpop.f32.mrf.mxu2  ;;  %2089 = vadd.xlane.f32.xlu1 %v2088_v8 }
 0x9c5   : > { %v2090_v2 = vpop.xlane.xlu1 %2089 }
 0x9c6   : > { %v2091_v12 = vmul.f32 %v2090_v2, %v3648_v10 }
 0x9c8   : > { %v2092_v13 = vsub.f32 %v3806_v7, %v2091_v12 }
 0x9ca   : > { %v2093_v5 = vmul.f32 %v2092_v13, %v2092_v13 }
 0x9cc   : > { %v2094_v14 = vsel %vm1348_vm1, %v2093_v5, 0.0 }
 0x9cd   : > { %2095 = vadd.xlane.f32.xlu1 %v2094_v14 }
 0xa40   : > { %v2096_v63 = vpop.xlane.xlu1 %2095 }
 0xa41   : > { %v2097_v17 = vmul.f32 %v2096_v63, %v3648_v10 }
 0xa43   : > { %v2098_v18 = vadd.f32 1e-05, %v2097_v17  ;;  %v2232_v17 = vperm.slane %v1276_v59, 2 }
 0xa45   : > { %3039 = vrsqrt.f32 %v2098_v18  ;;  %vm2105_vm5 = vweird.f32 %v2098_v18 }
 0xa4b   : > { %v3040_v41 = vpop.eup %3039 }
 0xa4c   : > { %v2100_v19 = vmul.f32 %v3040_v41, %v2098_v18  ;;  %vm2106_vm4 = vweird.f32 %v3040_v41 }
 0xa4d   : > { %vm2107_vm6 = vmor %vm2105_vm5, %vm2106_vm4 }
 0xa4e   : > { %v2101_v20 = vmul.f32 %v3040_v41, %v2100_v19 }
 0xa50   : > { %v2102_v22 = vmul.f32 0.5, %v2101_v20 }
 0xa52   : > { %v2103_v23 = vsub.f32 1.5, %v2102_v22 }
 0xa54   : > { %v2104_v24 = vmul.f32 %v3040_v41, %v2103_v23 }
 0xa56   : > { %v2108_v27 = vsel %vm2107_vm6, %v3040_v41, %v2104_v24 }
 0xa57   : > { %v2109_v28 = vmul.f32 %v2108_v27, %v2092_v13 }
 0xa59   : > { %v2111_v30 = vmul.f32 %v2110_v25, %v2109_v28 }
 0xa5b   : > { %v2113_v33 = vadd.f32 %v2112_v29, %v2111_v30 }
 0xa5d   : > { %v2114_v34 = vpack.c.bf16 %v2113_v33, %v2113_v33 }
 0xa5f   : > { %2826 = vmatmul.msk.bf16.vlgmr.msrb.gmra.mxu3 %vm1348_vm1, %v2114_v34 }
 0xae2   : > { %v2140_v44 = vpop.f32.mrf.mxu3 }
 0xae3   : > { %v2141_v46 = vadd.f32 %v2140_v44, %v2115_v42 }
 0xae5   : > { %v2827_v47 = vmul.f32 -1.442695, %v2141_v46 }
 0xae7   : > { %3041 = vpow2.f32 %v2827_v47 }
 0xaea   : > { %v2142_v11 = vpop.f32.mrf.mxu3 }
 0xaed   : > { %v3042_v48 = vpop.eup %3041 }
 0xaee   : > { %v2147_v57 = vadd.f32 1.0, %v3042_v48 }
 0xaf0   : > { %3043 = vrcp.f32 %v2147_v57  ;;  %v2159_v36 = vand.u32 2147483648, %v2147_v57  ;;  %v2157_v53 = vand.u32 2147483647, %v2147_v57  ;;  %vm2153_vm8 = vweird.f32 %v2147_v57 }
 0xaf2   : > { %v2160_v26 = vor.u32 1.1754944e-38, %v2159_v36  ;;  %vm2158_vm11 = vcmp.eq.f32.partialorder %v2157_v53, 8.507059e+37 }
 0xaf6   : > { %v3044_v49 = vpop.eup %3043 }
 0xaf7   : > { %v2149_v50 = vmul.f32 %v3044_v49, %v2147_v57  ;;  %vm2154_vm7 = vweird.f32 %v3044_v49 }
 0xaf8   : > { %vm2155_vm9 = vmor %vm2153_vm8, %vm2154_vm7 }
 0xaf9   : > { %v2150_v51 = vsub.f32 1.0, %v2149_v50 }
 0xafb   : > { %v2151_v52 = vmul.f32 %v3044_v49, %v2150_v51 }
 0xafd   : > { %v2152_v37 = vadd.f32 %v3044_v49, %v2151_v52 }
 0xaff   : > { %v2156_v54 = vsel %vm2155_vm9, %v3044_v49, %v2152_v37 }
 0xb00   : > { %v2161_v55 = vsel %vm2158_vm11, %v2160_v26, %v2156_v54 }
 0xb01   : > { %v2163_v56 = vmul.f32 %v2161_v55, %v2141_v46 }
 0xb03   : > { %v2164_v58 = vpack.c.bf16 %v2163_v56, %v2163_v56 }
 0xb05   : > { %2844 = vmatmul.msk.bf16.vlgmr.msrb.gmra.mxu1 %vm1458_vm10, %v2164_v58 }
 0xb82   : > { %v2202_v38 = vpop.f32.mrf.mxu1 }
 0xb83   : > { %v2203_v61 = vadd.f32 %v2202_v38, %v2165_v60 }
 0xb85   : > { %v2206_v43 = vmul.f32 0.5, %v2203_v61 }
 0xb87   : > { %v2207_v62 = vadd.f32 %v2206_v43, %v3806_v7 }
 0xb89   : > { %v2208_v0 = vsel %vm1348_vm1, %v2207_v62, 0.0 }
 0xb8a   : > { %v2204_v1 = vpop.f32.mrf.mxu1  ;;  %2209 = vadd.xlane.f32.xlu2 %v2208_v0 }
 0xbfd   : > { %v2210_v3 = vpop.xlane.xlu2 %2209 }
 0xbfe   : > { %v2211_v45 = vmul.f32 %v2210_v3, %v3648_v10 }
 0xc00   : > { %v2212_v4 = vsub.f32 %v2207_v62, %v2211_v45 }
 0xc02   : > { %v2213_v6 = vmul.f32 %v2212_v4, %v2212_v4 }
 0xc04   : > { %v2214_v21 = vsel %vm1348_vm1, %v2213_v6, 0.0 }
 0xc05   : > { %2215 = vadd.xlane.f32.xlu1 %v2214_v21 }
 0xc78   : > { %v2216_v8 = vpop.xlane.xlu1 %2215 }
 0xc79   : > { %v2217_v9 = vmul.f32 %v2216_v8, %v3648_v10 }
 0xc7b   : > { %v2218_v2 = vadd.f32 1e-05, %v2217_v9 }
 0xc7d   : > { %3045 = vrsqrt.f32 %v2218_v2  ;;  %vm2225_vm12 = vweird.f32 %v2218_v2 }
 0xc83   : > { %v3046_v12 = vpop.eup %3045 }
 0xc84   : > { %v2220_v7 = vmul.f32 %v3046_v12, %v2218_v2  ;;  %vm2226_vm10 = vweird.f32 %v3046_v12 }
 0xc85   : > { %vm2227_vm13 = vmor %vm2225_vm12, %vm2226_vm10 }
 0xc86   : > { %v2221_v13 = vmul.f32 %v3046_v12, %v2220_v7 }
 0xc88   : > { %v2222_v5 = vmul.f32 0.5, %v2221_v13 }
 0xc8a   : > { %v2223_v14 = vsub.f32 1.5, %v2222_v5 }
 0xc8c   : > { %v2224_v15 = vmul.f32 %v3046_v12, %v2223_v14 }
 0xc8e   : > { %v2228_v63 = vsel %vm2227_vm13, %v3046_v12, %v2224_v15 }
 0xc8f   : > { %v2229_v18 = vmul.f32 %v2228_v63, %v2212_v4 }
 0xc91   : > { %v2231_v41 = vmul.f32 %v2230_v16, %v2229_v18  ;;  %2238 = sbr.rel (%p2845_p10) target bundleno = 3493 (0xda5), region = 140 }
 0xc93   : > { %v2233_v19 = vadd.f32 %v2232_v17, %v2231_v41 }
 0xc95   : > { %2234 = vst.msk [vmem:[%s3639_s20] sm:$0xff] %vm1348_vm1, %v2233_v19 }
 0xc96   : > { %v2241_v20 = vsel %vm1348_vm1, %v2233_v19, 0.0  ;;  %v3245_v22 = vmov 0   ;;  %v3049_v44 = vld [vmem:[%s4042_s26] ss:$0 sm:$0xff] }
 0xc97   : > { %2242 = vadd.xlane.f32.xlu0 %v2241_v20  ;;  %3047 = vset.pattern.permute.xlu1 %v3245_v22 }
 0xc98   : > { %3048 = vset.pattern.permute.xlu0 %v3245_v22  ;;  %2273 = vperm.xlu1 %3047, %v3695_v31  }
 0xd0a   : > { %v2243_v23 = vpop.xlane.xlu0 %2242  ;;  %v2274_v11 = vpop.permute.xlu1 %2273 }
 0xd0b   : > { %v2244_v24 = vmul.f32 %v2243_v23, %v3648_v10 }
 0xd0d   : > { %v2245_v25 = vsub.f32 %v2233_v19, %v2244_v24 }
 0xd0f   : > { %v2246_v27 = vmul.f32 %v2245_v25, %v2245_v25 }
 0xd11   : > { %v2247_v28 = vsel %vm1348_vm1, %v2246_v27, 0.0 }
 0xd12   : > { %2248 = vadd.xlane.f32.xlu0 %v2247_v28 }
 0xd85   : > { %v2249_v29 = vpop.xlane.xlu0 %2248 }
 0xd86   : > { %v2250_v30 = vmul.f32 %v2249_v29, %v3648_v10  ;;  %v3050_v10 = vld [vmem:[%s4043_s21] ss:$0 sm:$0xff] }
 0xd88   : > { %v2251_v33 = vadd.f32 1e-05, %v2250_v30 }
 0xd8a   : > { %3051 = vrsqrt.f32 %v2251_v33  ;;  %vm2258_vm15 = vweird.f32 %v2251_v33 }
 0xd90   : > { %v3052_v34 = vpop.eup %3051 }
 0xd91   : > { %v2253_v35 = vmul.f32 %v3052_v34, %v2251_v33  ;;  %vm2259_vm14 = vweird.f32 %v3052_v34 }
 0xd92   : > { %vm2260_vm0 = vmor %vm2258_vm15, %vm2259_vm14 }
 0xd93   : > { %v2254_v39 = vmul.f32 %v3052_v34, %v2253_v35 }
 0xd95   : > { %v2255_v40 = vmul.f32 0.5, %v2254_v39 }
 0xd97   : > { %v2256_v42 = vsub.f32 1.5, %v2255_v40 }
 0xd99   : > { %v2257_v31 = vmul.f32 %v3052_v34, %v2256_v42 }
 0xd9b   : > { %v2261_v32 = vsel %vm2260_vm0, %v3052_v34, %v2257_v31 }
 0xd9c   : > { %v2262_v46 = vmul.f32 %v2261_v32, %v2245_v25 }
 0xd9e   : > { %v2266_v47 = vmul.f32 %v3049_v44, %v2262_v46 }
 0xda0   : > { %v2270_v48 = vadd.f32 %v3050_v10, %v2266_v47 }
 0xda2   : > { %v2276_v57 = vmul.f32 %v2274_v11, %v2270_v48 }
 0xda4   : > { %2277 = vst.msk [vmem:[%s3639_s20] sm:$0xff] %vm1348_vm1, %v2276_v57 }
 0xda5 PF: > { %s4044_s30 = sld [smem:[#allocation16_spill]]  ;;  %s2291_s3 = sshll.u32 %s3639_s20, 4  ;;  %s2292_s3 = int_to_ptr.vmem [resolvable:$true] %s2291_s3 }
 0xda6   : > { %s4045_s2 = sld [smem:[#allocation12_spill]] }
 0xda7   : > { %s4047_s4 = sld [smem:[#allocation62_spill]] }
 0xdab   : > { %s2847_s18 = sshll.u32 %s4044_s30, 3 }
 0xdac   : > { %s4049_s13 = sand.u32 1, %s4045_s2  }
 0xdad   : > { %s4048_s12 = smov %s4047_s4  ;;  %s2289_s9 = scalar_lea.hbm %s4047_s4, %s2847_s18 }
 0xdae   : > { %s2293_s0 = sshll.u32 %s2289_s9, 4  ;;  %s2279_s16 = scalar_lea.sflag [#allocation4], %s4049_s13  ;;  %s2294_s0 = int_to_ptr.hbm [resolvable:$true] %s2293_s0 }
 0xdaf   : > { %s3127_s27 = sshra.s32 %s2294_s0, 4  ;;  %s3133_s17 = scalar_lea.hbm %s4048_s12, 16  ;;  %s3128_s27 = int_to_ptr.hbm [resolvable:$true] %s3127_s27 }
 0xdb0   : > { %s3129_s28 = scalar_lea.hbm %s3128_s27, 8  ;;  %p3134_p1 = scmp.lt.s32.totalorder %s3128_s27, %s4048_s12 }
 0xdb1   : > { %p3130_p11 = scmp.ne.s32.totalorder %s3128_s27, %s3129_s28  ;;  %p3135_p4 = scmp.lt.s32.totalorder %s3133_s17, %s3129_s28 }
 0xdb3   : > { %p3131_p13 = pnand %p3130_p11, %p3469_p12  ;;  %p3136_p5 = por %p3135_p4, %p3134_p1 }
 0xdb5   : > { %p3132_p0 = pneg %p3131_p13 }
 0xdb7   : > { %p3137_p6 = pnand %p3136_p5, %p3132_p0 }
 0xdb9   : > { %3140 = shalt.err (!%p3137_p6)
}
 0xdba   : > { %2901 = dma.vmem_to_hbm [thread:$0]  (%p3469_p12), %s2292_s3, 128, %s2294_s0, %s2279_s16  }
 0xdbb PF: > { %s4050_s20 = sld [smem:[#allocation19_spill]] }
 0xdbc   : > { %s4051_s25 = sld [smem:[#allocation11_spill]] }
 0xdc1   : > { %p2915_p7 = scmp.ge.s32.totalorder %s4050_s20, 2 }
 0xdc2   : > { %s2305_s7 = sand.u32 1, %s4051_s25  }
 0xdc3   : > { %p2911_p3 = pnand %p2915_p7, %p3479_p2  ;;  %s2306_s14 = scalar_lea.sflag [#allocation4], %s2305_s7 }
 0xdc5   : > { %p2912_p9 = pneg %p2911_p3 }
 0xdc7   : > { %3194 = dma.done.wait (%p2912_p9), %s2306_s14, 128  }
 0xdc8   : > { %3196 = vsyncadd (%p2912_p9), %s2306_s14, 4294967168  ;;  %s45_s2 = sadd.s32 1, %s4050_s20   ;;  %s4053_s27 = sld [smem:[#allocation12_spill]] }
 0xdc9   : > { %p42_p8 = scmp.ge.s32.totalorder %s45_s2, 6   ;;  %s4054_s3 = sld [smem:[#allocation13_spill]] }
 0xdca   : > { %s4055_s7 = sld [smem:[#allocation23_spill]] }
 0xdcb   : > { %s4056_s28 = sld [smem:[#allocation14_spill]] }
 0xdcc   : > { %s4057_s8 = sld [smem:[#allocation15_spill]] }
 0xdcd   : > { %s4058_s4 = sld [smem:[#allocation22_spill]]  ;;  %44 = sbr.rel (!%p42_p8) target bundleno = 39 (0x27), region = 253 }
 0xdce   : > { %s4059_s29 = sld [smem:[#allocation17_spill]] }
 0xdcf   : > { %s4060_s0 = sld [smem:[#allocation18_spill]] }
 0xdd0   : > { %s4061_s9 = sld [smem:[#allocation20_spill]] }
 0xdd1   : > { %s4062_s30 = sld [smem:[#allocation21_spill]] }
 0xdd2   :  { %2312 = vsyncpa [#allocation3], 1 }
 0xdd3   :  { %2314 = vsyncpa [#allocation3 + $0x1], 1 }
 0xdd4   :  { %2315 = vsyncpa [#allocation6], 1 }
 0xdd5   :  { %2317 = vsyncpa [#allocation6 + $0x1], 1 }
 0xdd6   :  { %2318 = vsyncpa [#allocation4], 1 }
 0xdd7   :  { %2320 = vsyncpa [#allocation4 + $0x1], 1 }

</bundles_post_ra>
